<compile_context>
chip_gen: v7x
topology: tpu7x:2x2x1
jax: 0.10.0
libtpu: 0.0.40
codegen_flags: <defaults>
</compile_context>

<pallas_src>
import functools

import jax
import jax.numpy as jnp
from jax.experimental import pallas as pl
from jax.experimental.pallas import tpu as pltpu

IN_FEATURES = 28 * 28        # 784
HIDDEN = 512
OUT_FEATURES = 10

K_PAD = 896                  # round_up(784, 128): lane-aligned contraction dim
OUT_PAD = 128                # lane-dense output head (sliced back to 10)


def _round_up(x, m):
    return (x + m - 1) // m * m


# ---------------------------------------------------------------------------
# Kernel: one batch tile through all three Linear+ReLU layers on the MXU.
# ---------------------------------------------------------------------------
def mlp_kernel(x_ref, w1_ref, b1_ref, w2_ref, b2_ref, w3_ref, b3_ref, o_ref):
    # x: (bm, K_PAD) compute dtype; w*: compute dtype; b*: f32; o: (bm, OUT_PAD) f32.
    x = x_ref[...]
    h1 = jnp.dot(x, w1_ref[...], preferred_element_type=jnp.float32) + b1_ref[...]
    h1 = jnp.maximum(h1, 0.0).astype(x.dtype)
    h2 = jnp.dot(h1, w2_ref[...], preferred_element_type=jnp.float32) + b2_ref[...]
    h2 = jnp.maximum(h2, 0.0).astype(x.dtype)
    h3 = jnp.dot(h2, w3_ref[...], preferred_element_type=jnp.float32) + b3_ref[...]
    o_ref[...] = jnp.maximum(h3, 0.0).astype(o_ref.dtype)


def _build_mlp_call(bm, b_pad, cost, single_buffer_weights, x_buffers):
    if single_buffer_weights:
        # Constant index_map -> block never re-DMAs; one buffer suffices and
        # frees ~half the weight VMEM footprint (matters on v7x 64 MiB VMEM).
        def resident(shape):
            return pl.BlockSpec(shape, lambda i: (0, 0),
                                pipeline_mode=pl.Buffered(1))
    else:
        def resident(shape):
            return pl.BlockSpec(shape, lambda i: (0, 0))

    if x_buffers != 2:
        x_spec = pl.BlockSpec((bm, K_PAD), lambda i: (i, 0),
                              pipeline_mode=pl.Buffered(x_buffers))
    else:
        x_spec = pl.BlockSpec((bm, K_PAD), lambda i: (i, 0))

    return pl.pallas_call(
        mlp_kernel,
        out_shape=jax.ShapeDtypeStruct((b_pad, OUT_PAD), jnp.float32),
        grid_spec=pltpu.PrefetchScalarGridSpec(
            num_scalar_prefetch=0,
            grid=(b_pad // bm,),
            in_specs=[
                x_spec,
                resident((K_PAD, HIDDEN)),
                resident((1, HIDDEN)),
                resident((HIDDEN, HIDDEN)),
                resident((1, HIDDEN)),
                resident((HIDDEN, OUT_PAD)),
                resident((1, OUT_PAD)),
            ],
            out_specs=pl.BlockSpec((bm, OUT_PAD), lambda i: (i, 0)),
        ),
        compiler_params=pltpu.CompilerParams(
            dimension_semantics=("parallel",),   # batch tiles shard across TCs
        ),
        cost_estimate=cost,
    )


# ---------------------------------------------------------------------------
# One-time parameter preparation: pad to lane-aligned shapes and cast to the
# MXU compute dtype ONCE, not on every forward call.
# ---------------------------------------------------------------------------
def prepare_params(params, compute_dtype=jnp.bfloat16):
    w1, b1, w2, b2, w3, b3 = params
    cd = jnp.dtype(compute_dtype)
    w1p = jnp.pad(w1, ((0, K_PAD - IN_FEATURES), (0, 0))).astype(cd)
    w2p = w2.astype(cd)
    w3p = jnp.pad(w3, ((0, 0), (0, OUT_PAD - OUT_FEATURES))).astype(cd)
    b1p = b1.astype(jnp.float32)
    b2p = b2.astype(jnp.float32)
    b3p = jnp.pad(b3, ((0, 0), (0, OUT_PAD - OUT_FEATURES))).astype(jnp.float32)
    return (w1p, b1p, w2p, b2p, w3p, b3p)


def _pick_bm(B):
    b8 = _round_up(B, 8)
    if b8 <= 256:
        # Once the batch reaches 256 rows, split it into two 128-row tiles so
        # v7x's two TensorCores both run; otherwise one tile covers the batch.
        return 128 if b8 >= 256 else b8
    # Large batch: big MXU-aligned tiles (multiple of 256 for v6e/v7x 2x256^2,
    # also a multiple of 128 for v5e) to amortize ~0.35us/grid-step overhead,
    # while keeping >= 2 grid steps. VMEM at bm=512 stays well inside every
    # generation's default scoped limit.
    bm = min(512, _round_up(b8 // 2, 256))
    return max(bm, 256)


@functools.partial(jax.jit,
                   static_argnames=("bm", "single_buffer_weights", "x_buffers"))
def _forward_impl(x_nchw, prepped, bm, single_buffer_weights, x_buffers):
    w1, b1, w2, b2, w3, b3 = prepped
    cd = w1.dtype
    B = x_nchw.shape[0]

    # nn.Flatten: row-major flatten of all dims after batch.
    x2d = x_nchw.reshape(B, -1).astype(cd)          # cast BEFORE pad: 2 B/elem slab
    assert x2d.shape[1] == IN_FEATURES
    x2d = jnp.pad(x2d, ((0, 0), (0, K_PAD - IN_FEATURES)))

    b_pad = _round_up(B, bm)
    if b_pad != B:
        x2d = jnp.pad(x2d, ((0, b_pad - B), (0, 0)))

    args = (x2d, w1, b1, w2, b2, w3, b3)
    flops = 2 * b_pad * (K_PAD * HIDDEN + HIDDEN * HIDDEN + HIDDEN * OUT_PAD)
    bytes_accessed = (sum(int(a.size) * a.dtype.itemsize for a in args)
                      + b_pad * OUT_PAD * 4)
    cost = pl.CostEstimate(flops=flops, transcendentals=0,
                           bytes_accessed=bytes_accessed)

    out = _build_mlp_call(bm, b_pad, cost, single_buffer_weights, x_buffers)(*args)
    return out[:B, :OUT_FEATURES]


def neural_network_forward(x_nchw, prepped_params, *, bm=None):
    """Forward pass: Flatten -> (Linear+ReLU)x3.

    x_nchw: (B, 1, 28, 28) f32.  prepped_params: output of prepare_params().
    Returns (B, 10) f32.
    """
    B = x_nchw.shape[0]
    if bm is None:
        bm = _pick_bm(B)
    bm = max(8, _round_up(bm, 8))
    steps = _round_up(B, bm) // bm
    # Small tiles on multi-step grids: give x a 3rd pipeline buffer so its DMA
    # stays hidden on v5e; at bm >= 128 the default double buffering is enough.
    x_buffers = 3 if (bm < 128 and steps > 2) else 2

    try:
        return _forward_impl(x_nchw, prepped_params, bm=bm,
                             single_buffer_weights=True, x_buffers=x_buffers)
    except (TypeError, pltpu.LoweringException):
        # Narrow fallback: only if this JAX version rejects pipeline_mode /
        # Buffered. Uses default double buffering (correct, a bit more VMEM).
        return _forward_impl(x_nchw, prepped_params, bm=bm,
                             single_buffer_weights=False, x_buffers=2)


# ---------------------------------------------------------------------------
# Init + reference
# ---------------------------------------------------------------------------
def init_params(key):
    """PyTorch-style init; weights stored (in, out) so kernel computes x @ W + b."""
    k1, k2, k3, k4, k5, k6 = jax.random.split(key, 6)

    def uniform_fanin(kw, kb, fan_in, fan_out):
        bound = 1.0 / jnp.sqrt(jnp.float32(fan_in))
        w = jax.random.uniform(kw, (fan_in, fan_out), jnp.float32, -bound, bound)
        b = jax.random.uniform(kb, (1, fan_out), jnp.float32, -bound, bound)
        return w, b

    w1, b1 = uniform_fanin(k1, k2, IN_FEATURES, HIDDEN)
    w2, b2 = uniform_fanin(k3, k4, HIDDEN, HIDDEN)
    w3, b3 = uniform_fanin(k5, k6, HIDDEN, OUT_FEATURES)
    return (w1, b1, w2, b2, w3, b3)


def _reference(x, params):
    w1, b1, w2, b2, w3, b3 = params
    xf = x.reshape(x.shape[0], -1)
    h = jnp.maximum(xf @ w1 + b1, 0.0)
    h = jnp.maximum(h @ w2 + b2, 0.0)
    return jnp.maximum(h @ w3 + b3, 0.0)


if __name__ == "__main__":
    key = jax.random.PRNGKey(0)
    kx, kp = jax.random.split(key)
    raw_params = init_params(kp)

    # --- test 1: small batch, f32 compute path, strict check ----------------
    B = 8
    x = jax.random.normal(kx, (B, 1, 28, 28), jnp.float32)   # NCHW like PyTorch
    ref = _reference(x, raw_params)

    prepped_f32 = prepare_params(raw_params, compute_dtype=jnp.float32)
    logits_f32 = jax.block_until_ready(neural_network_forward(x, prepped_f32))
    assert logits_f32.shape == (B, OUT_FEATURES)
    assert jnp.allclose(logits_f32, ref, atol=1e-4, rtol=1e-4)

    # --- test 2: default bf16 fast path (bf16 MXU operands, f32 accumulate) --
    prepped_bf16 = prepare_params(raw_params)                # bf16 default
    logits_bf16 = jax.block_until_ready(neural_network_forward(x, prepped_bf16))
    assert logits_bf16.shape == (B, OUT_FEATURES)
    assert jnp.allclose(logits_bf16, ref, atol=1e-1, rtol=5e-2)

    # --- test 3: bigger ragged batch -> default heuristic gives a >=2-step
    #             parallel grid (exercises batch padding + resident weights) ---
    B2 = 260
    x2 = jax.random.normal(jax.random.fold_in(kx, 1), (B2, 1, 28, 28), jnp.float32)
    ref2 = _reference(x2, raw_params)
    logits2 = jax.block_until_ready(neural_network_forward(x2, prepped_bf16))
    assert logits2.shape == (B2, OUT_FEATURES)
    assert jnp.allclose(logits2, ref2, atol=1e-1, rtol=5e-2)

    # --- test 4: tiny explicit tile -> multi-step grid with triple-buffered x -
    B3 = 20
    x3 = jax.random.normal(jax.random.fold_in(kx, 2), (B3, 1, 28, 28), jnp.float32)
    ref3 = _reference(x3, raw_params)
    logits3 = jax.block_until_ready(neural_network_forward(x3, prepped_bf16, bm=8))
    assert logits3.shape == (B3, OUT_FEATURES)
    assert jnp.allclose(logits3, ref3, atol=1e-1, rtol=5e-2)

    print("KERNEL_OK")
</pallas_src>

<mosaic_0001>
module attributes {stable_mosaic.version = 11 : i64} {
  func.func @mlp_kernel(%arg0: i32, %arg1: memref<8x896xf32, #tpu.memory_space<vmem>>, %arg2: memref<896x512xf32, #tpu.memory_space<vmem>>, %arg3: memref<1x512xf32, #tpu.memory_space<vmem>>, %arg4: memref<512x512xf32, #tpu.memory_space<vmem>>, %arg5: memref<1x512xf32, #tpu.memory_space<vmem>>, %arg6: memref<512x128xf32, #tpu.memory_space<vmem>>, %arg7: memref<1x128xf32, #tpu.memory_space<vmem>>, %arg8: memref<8x128xf32, #tpu.memory_space<vmem>>) attributes {dimension_semantics = [#tpu.dimension_semantics<parallel>], iteration_bounds = array<i64: 1>, scalar_prefetch = 0 : i64, scratch_operands = 0 : i64, tpu.core_type = #tpu.core_type<tc>, window_params = [{transform_indices = @transform_0, window_bounds = array<i64: 8, 896>}, {pipeline_mode = #tpu.pipeline_mode<synchronous>, transform_indices = @transform_1, window_bounds = array<i64: 896, 512>}, {pipeline_mode = #tpu.pipeline_mode<synchronous>, transform_indices = @transform_2, window_bounds = array<i64: 1, 512>}, {pipeline_mode = #tpu.pipeline_mode<synchronous>, transform_indices = @transform_3, window_bounds = array<i64: 512, 512>}, {pipeline_mode = #tpu.pipeline_mode<synchronous>, transform_indices = @transform_4, window_bounds = array<i64: 1, 512>}, {pipeline_mode = #tpu.pipeline_mode<synchronous>, transform_indices = @transform_5, window_bounds = array<i64: 512, 128>}, {pipeline_mode = #tpu.pipeline_mode<synchronous>, transform_indices = @transform_6, window_bounds = array<i64: 1, 128>}, {transform_indices = @transform_7, window_bounds = array<i64: 8, 128>}]} {
    %c0 = arith.constant 0 : index
    %c0_0 = arith.constant 0 : index
    %0 = vector.load %arg1[%c0, %c0_0] : memref<8x896xf32, #tpu.memory_space<vmem>>, vector<8x896xf32>
    %c0_1 = arith.constant 0 : index
    %c0_2 = arith.constant 0 : index
    %1 = vector.load %arg2[%c0_1, %c0_2] : memref<896x512xf32, #tpu.memory_space<vmem>>, vector<896x512xf32>
    %cst = arith.constant dense<0.000000e+00> : vector<8x512xf32>
    %2 = tpu.matmul %0, %1, %cst {dimension_numbers = #tpu.dot_dimension_numbers<[1], [0], [0], [1], [0, 0, 1, 1], [], []>} : vector<8x896xf32>, vector<896x512xf32>, vector<8x512xf32> -> vector<8x512xf32>
    %c0_3 = arith.constant 0 : index
    %c0_4 = arith.constant 0 : index
    %3 = vector.load %arg3[%c0_3, %c0_4] : memref<1x512xf32, #tpu.memory_space<vmem>>, vector<1x512xf32>
    %4 = vector.broadcast %3 : vector<1x512xf32> to vector<8x512xf32>
    %5 = arith.addf %2, %4 : vector<8x512xf32>
    %cst_5 = arith.constant 0.000000e+00 : f32
    %6 = vector.broadcast %cst_5 : f32 to vector<8x512xf32>
    %7 = arith.maximumf %5, %6 : vector<8x512xf32>
    %c0_6 = arith.constant 0 : index
    %c0_7 = arith.constant 0 : index
    %8 = vector.load %arg4[%c0_6, %c0_7] : memref<512x512xf32, #tpu.memory_space<vmem>>, vector<512x512xf32>
    %cst_8 = arith.constant dense<0.000000e+00> : vector<8x512xf32>
    %9 = tpu.matmul %7, %8, %cst_8 {dimension_numbers = #tpu.dot_dimension_numbers<[1], [0], [0], [1], [0, 0, 1, 1], [], []>} : vector<8x512xf32>, vector<512x512xf32>, vector<8x512xf32> -> vector<8x512xf32>
    %c0_9 = arith.constant 0 : index
    %c0_10 = arith.constant 0 : index
    %10 = vector.load %arg5[%c0_9, %c0_10] : memref<1x512xf32, #tpu.memory_space<vmem>>, vector<1x512xf32>
    %11 = vector.broadcast %10 : vector<1x512xf32> to vector<8x512xf32>
    %12 = arith.addf %9, %11 : vector<8x512xf32>
    %cst_11 = arith.constant 0.000000e+00 : f32
    %13 = vector.broadcast %cst_11 : f32 to vector<8x512xf32>
    %14 = arith.maximumf %12, %13 : vector<8x512xf32>
    %c0_12 = arith.constant 0 : index
    %c0_13 = arith.constant 0 : index
    %15 = vector.load %arg6[%c0_12, %c0_13] : memref<512x128xf32, #tpu.memory_space<vmem>>, vector<512x128xf32>
    %cst_14 = arith.constant dense<0.000000e+00> : vector<8x128xf32>
    %16 = tpu.matmul %14, %15, %cst_14 {dimension_numbers = #tpu.dot_dimension_numbers<[1], [0], [0], [1], [0, 0, 1, 1], [], []>} : vector<8x512xf32>, vector<512x128xf32>, vector<8x128xf32> -> vector<8x128xf32>
    %c0_15 = arith.constant 0 : index
    %c0_16 = arith.constant 0 : index
    %17 = vector.load %arg7[%c0_15, %c0_16] : memref<1x128xf32, #tpu.memory_space<vmem>>, vector<1x128xf32>
    %18 = vector.broadcast %17 : vector<1x128xf32> to vector<8x128xf32>
    %19 = arith.addf %16, %18 : vector<8x128xf32>
    %cst_17 = arith.constant 0.000000e+00 : f32
    %20 = vector.broadcast %cst_17 : f32 to vector<8x128xf32>
    %21 = arith.maximumf %19, %20 : vector<8x128xf32>
    %c0_18 = arith.constant 0 : index
    %c0_19 = arith.constant 0 : index
    %22 = vector.load %arg8[%c0_18, %c0_19] : memref<8x128xf32, #tpu.memory_space<vmem>>, vector<8x128xf32>
    tpu.vector_store %arg8[%c0_18, %c0_19], %21 {strides = array<i32>} : memref<8x128xf32, #tpu.memory_space<vmem>>, vector<8x128xf32>,
    return
  }
  func.func @transform_0(%arg0: i32) -> (i32, i32) {
    %c0_i32 = arith.constant 0 : i32
    %c0_i32_0 = arith.constant 0 : i32
    return %arg0, %c0_i32 : i32, i32
  }
  func.func @transform_1(%arg0: i32) -> (i32, i32) {
    %c0_i32 = arith.constant 0 : i32
    %c0_i32_0 = arith.constant 0 : i32
    %c0_i32_1 = arith.constant 0 : i32
    return %c0_i32, %c0_i32_0 : i32, i32
  }
  func.func @transform_2(%arg0: i32) -> (i32, i32) {
    %c0_i32 = arith.constant 0 : i32
    %c0_i32_0 = arith.constant 0 : i32
    %c0_i32_1 = arith.constant 0 : i32
    return %c0_i32, %c0_i32_0 : i32, i32
  }
  func.func @transform_3(%arg0: i32) -> (i32, i32) {
    %c0_i32 = arith.constant 0 : i32
    %c0_i32_0 = arith.constant 0 : i32
    %c0_i32_1 = arith.constant 0 : i32
    return %c0_i32, %c0_i32_0 : i32, i32
  }
  func.func @transform_4(%arg0: i32) -> (i32, i32) {
    %c0_i32 = arith.constant 0 : i32
    %c0_i32_0 = arith.constant 0 : i32
    %c0_i32_1 = arith.constant 0 : i32
    return %c0_i32, %c0_i32_0 : i32, i32
  }
  func.func @transform_5(%arg0: i32) -> (i32, i32) {
    %c0_i32 = arith.constant 0 : i32
    %c0_i32_0 = arith.constant 0 : i32
    %c0_i32_1 = arith.constant 0 : i32
    return %c0_i32, %c0_i32_0 : i32, i32
  }
  func.func @transform_6(%arg0: i32) -> (i32, i32) {
    %c0_i32 = arith.constant 0 : i32
    %c0_i32_0 = arith.constant 0 : i32
    %c0_i32_1 = arith.constant 0 : i32
    return %c0_i32, %c0_i32_0 : i32, i32
  }
  func.func @transform_7(%arg0: i32) -> (i32, i32) {
    %c0_i32 = arith.constant 0 : i32
    %c0_i32_0 = arith.constant 0 : i32
    return %arg0, %c0_i32 : i32, i32
  }
}

</mosaic_0001>

<bundles_post_ra>
// kernel: _forward_impl.1
= control target key start
LH: loop header
LB: loop body
LE: loop exit
PB: predicated region body
PF: predicated region fallthrough
CT: control target
= control target key end

     0   :  { %12 = vsyncpa [#allocation3], 0  ;;  %s3176_s0 = inlined_call_operand.vmem [shape: f32[8,896], index: 0, kind: input, shape index: {}]   ;;  %s3177_s1 = inlined_call_operand.hbm [shape: f32[896,512], index: 1, kind: input, shape index: {}]   ;;  %s3178_s2 = inlined_call_operand.hbm [shape: f32[1,512], index: 2, kind: input, shape index: {}]   ;;  %s3179_s3 = inlined_call_operand.hbm [shape: f32[512,512], index: 3, kind: input, shape index: {}]   ;;  %s3180_s4 = inlined_call_operand.hbm [shape: f32[1,512], index: 4, kind: input, shape index: {}]   ;;  %s3181_s5 = inlined_call_operand.hbm [shape: f32[512,128], index: 5, kind: input, shape index: {}]   ;;  %s3182_s6 = inlined_call_operand.hbm [shape: f32[1,128], index: 6, kind: input, shape index: {}]   ;;  %s3183_s7 = inlined_call_operand.hbm [shape: f32[8,128], index: 7, kind: output, shape index: {}]  }
   0x1   :  { %13 = vsyncpa [#allocation6], 0 }
   0x2   :  { %14 = vsyncpa [#allocation9], 0 }
   0x3   :  { %15 = vsyncpa [#allocation12], 0 }
   0x4   :  { %16 = vsyncpa [#allocation4], 0  ;;  %s2988_s24 = smov [#allocation5]   ;;  %s2989_s26 = smov [#allocation8]  }
   0x5   :  { %s37_s25 = sshll.u32 %s2988_s24, 4  ;;  %s59_s27 = sshll.u32 %s2989_s26, 4  ;;  %s38_s25 = int_to_ptr.vmem [resolvable:$true] %s37_s25  ;;  %s60_s27 = int_to_ptr.vmem [resolvable:$true] %s59_s27 }
   0x6   :  { %s2824_s30 = scalar_lea.hbm %s3178_s2, 64 }
   0x7   :  { %p2825_p0 = scmp.ne.s32.totalorder %s3178_s2, %s2824_s30  ;;  %p2828_p1 = scmp.lt.u32.totalorder %s2824_s30, %s3178_s2 }
   0x9   :  { %p2830_p2 = pnand %p2828_p1, %p2825_p0 }
   0xb   :  { %2833 = shalt.err (!%p2830_p2)
}
   0xc   :  { %s2834_s12 = scalar_lea.vmem %s38_s25, 64  ;;  %p2839_p4 = scmp.lt.s32.totalorder %s38_s25, %s38_s25 }
   0xd   :  { %p2835_p3 = scmp.ne.s32.totalorder %s38_s25, %s2834_s12  ;;  %p2840_p5 = scmp.lt.s32.totalorder %s2834_s12, %s2834_s12 }
   0xf   :  { %p2841_p6 = por %p2840_p5, %p2839_p4 }
  0x11   :  { %p2842_p7 = pnand %p2841_p6, %p2835_p3 }
  0x13   :  { %2845 = shalt.err (!%p2842_p7)
}
  0x14   :  { %40 = dma.hbm_to_vmem [thread:$0]  %s3178_s2, 64, %s38_s25, [#allocation6]  }
  0x15   :  { %s2846_s17 = scalar_lea.hbm %s3180_s4, 64 }
  0x16   :  { %p2847_p8 = scmp.ne.s32.totalorder %s3180_s4, %s2846_s17  ;;  %p2850_p9 = scmp.lt.u32.totalorder %s2846_s17, %s3180_s4 }
  0x18   :  { %p2852_p10 = pnand %p2850_p9, %p2847_p8 }
  0x1a   :  { %2855 = shalt.err (!%p2852_p10)
}
  0x1b   :  { %s2856_s22 = scalar_lea.vmem %s60_s27, 64  ;;  %p2861_p12 = scmp.lt.s32.totalorder %s60_s27, %s60_s27 }
  0x1c   :  { %p2857_p11 = scmp.ne.s32.totalorder %s60_s27, %s2856_s22  ;;  %p2862_p13 = scmp.lt.s32.totalorder %s2856_s22, %s2856_s22 }
  0x1e   :  { %p2863_p0 = por %p2862_p13, %p2861_p12 }
  0x20   :  { %p2864_p1 = pnand %p2863_p0, %p2857_p11 }
  0x22   :  { %2867 = shalt.err (!%p2864_p1)
}
  0x23   :  { %62 = dma.hbm_to_vmem [thread:$0]  %s3180_s4, 64, %s60_s27, [#allocation9]  }
  0x24   :  { %s2990_s24 = smov [#allocation2]   ;;  %s2868_s29 = scalar_lea.hbm %s3177_s1, 57344 }
  0x25   :  { %s24_s25 = sshll.u32 %s2990_s24, 4  ;;  %p2869_p2 = scmp.ne.s32.totalorder %s3177_s1, %s2868_s29  ;;  %s25_s25 = int_to_ptr.vmem [resolvable:$true] %s24_s25 }
  0x26   :  { %p2872_p3 = scmp.lt.u32.totalorder %s2868_s29, %s3177_s1 }
  0x28   :  { %p2874_p4 = pnand %p2872_p3, %p2869_p2 }
  0x2a   :  { %2877 = shalt.err (!%p2874_p4)
}
  0x2b   :  { %s2878_s11 = scalar_lea.vmem %s25_s25, 57344  ;;  %p2883_p6 = scmp.lt.s32.totalorder %s25_s25, %s25_s25 }
  0x2c   :  { %p2879_p5 = scmp.ne.s32.totalorder %s25_s25, %s2878_s11  ;;  %p2884_p7 = scmp.lt.s32.totalorder %s2878_s11, %s2878_s11 }
  0x2e   :  { %p2885_p8 = por %p2884_p7, %p2883_p6 }
  0x30   :  { %p2886_p9 = pnand %p2885_p8, %p2879_p5 }
  0x32   :  { %2889 = shalt.err (!%p2886_p9)
}
  0x33   :  { %s2991_s4 = smov 512   ;;  %s2992_s27 = smov 32  }
  0x34   :  { %30 = dma.hbm_to_vmem [thread:$0]  %s3177_s1, 57344, %s25_s25, [#allocation3], %s2991_s4, %s2991_s4, %s2992_s27  }
  0x35   :  { %s2993_s14 = smov [#allocation7]   ;;  %s2994_s16 = smov [#allocation10]  }
  0x36   :  { %s46_s15 = sshll.u32 %s2993_s14, 4  ;;  %s68_s17 = sshll.u32 %s2994_s16, 4  ;;  %s47_s15 = int_to_ptr.vmem [resolvable:$true] %s46_s15  ;;  %s69_s17 = int_to_ptr.vmem [resolvable:$true] %s68_s17 }
  0x37   :  { %s2890_s20 = scalar_lea.hbm %s3179_s3, 32768 }
  0x38   :  { %p2891_p10 = scmp.ne.s32.totalorder %s3179_s3, %s2890_s20  ;;  %p2894_p11 = scmp.lt.u32.totalorder %s2890_s20, %s3179_s3 }
  0x3a   :  { %p2896_p12 = pnand %p2894_p11, %p2891_p10 }
  0x3c   :  { %2899 = shalt.err (!%p2896_p12)
}
  0x3d   :  { %s2900_s1 = scalar_lea.vmem %s47_s15, 32768  ;;  %p2905_p0 = scmp.lt.s32.totalorder %s47_s15, %s47_s15 }
  0x3e   :  { %p2901_p13 = scmp.ne.s32.totalorder %s47_s15, %s2900_s1  ;;  %p2906_p1 = scmp.lt.s32.totalorder %s2900_s1, %s2900_s1 }
  0x40   :  { %p2907_p2 = por %p2906_p1, %p2905_p0 }
  0x42   :  { %p2908_p3 = pnand %p2907_p2, %p2901_p13 }
  0x44   :  { %2911 = shalt.err (!%p2908_p3)
}
  0x45   :  { %52 = dma.hbm_to_vmem [thread:$0]  %s3179_s3, 32768, %s47_s15, [#allocation6], %s2991_s4, %s2991_s4, %s2992_s27  }
  0x46   :  { %s2912_s29 = scalar_lea.hbm %s3181_s5, 8192 }
  0x47   :  { %p2913_p4 = scmp.ne.s32.totalorder %s3181_s5, %s2912_s29  ;;  %p2916_p5 = scmp.lt.u32.totalorder %s2912_s29, %s3181_s5 }
  0x49   :  { %p2918_p6 = pnand %p2916_p5, %p2913_p4 }
  0x4b   :  { %2921 = shalt.err (!%p2918_p6)
}
  0x4c   :  { %s2922_s11 = scalar_lea.vmem %s69_s17, 8192  ;;  %p2927_p8 = scmp.lt.s32.totalorder %s69_s17, %s69_s17 }
  0x4d   :  { %p2923_p7 = scmp.ne.s32.totalorder %s69_s17, %s2922_s11  ;;  %p2928_p9 = scmp.lt.s32.totalorder %s2922_s11, %s2922_s11 }
  0x4f   :  { %p2929_p10 = por %p2928_p9, %p2927_p8 }
  0x51   :  { %p2930_p11 = pnand %p2929_p10, %p2923_p7 }
  0x53   :  { %2933 = shalt.err (!%p2930_p11)
}
  0x54   :  { %s2995_s3 = smov 128   ;;  %s2996_s4 = smov 8  }
  0x55   :  { %74 = dma.hbm_to_vmem [thread:$0]  %s3181_s5, 8192, %s69_s17, [#allocation9], %s2995_s3, %s2995_s3, %s2996_s4  }
  0x56   :  { %s2997_s13 = smov [#allocation11]   ;;  %s2934_s18 = scalar_lea.hbm %s3182_s6, 16 }
  0x57   :  { %s81_s14 = sshll.u32 %s2997_s13, 4  ;;  %p2935_p12 = scmp.ne.s32.totalorder %s3182_s6, %s2934_s18  ;;  %s82_s14 = int_to_ptr.vmem [resolvable:$true] %s81_s14 }
  0x58   :  { %p2938_p13 = scmp.lt.u32.totalorder %s2934_s18, %s3182_s6 }
  0x5a   :  { %p2940_p0 = pnand %p2938_p13, %p2935_p12 }
  0x5c   :  { %2943 = shalt.err (!%p2940_p0)
}
  0x5d   :  { %s2944_s2 = scalar_lea.vmem %s82_s14, 16  ;;  %s2948_s5 = scalar_lea.vmem %s82_s14, 32 }
  0x5e   :  { %p2945_p1 = scmp.ne.s32.totalorder %s82_s14, %s2944_s2  ;;  %p2949_p2 = scmp.lt.s32.totalorder %s82_s14, %s82_s14 }
  0x5f   :  { %p2950_p3 = scmp.lt.s32.totalorder %s2948_s5, %s2944_s2 }
  0x61   :  { %p2951_p4 = por %p2950_p3, %p2949_p2 }
  0x63   :  { %p2952_p5 = pnand %p2951_p4, %p2945_p1 }
  0x65   :  { %2955 = shalt.err (!%p2952_p5)
}
  0x66   :  { %84 = dma.hbm_to_vmem [thread:$0]  %s3182_s6, 16, %s82_s14, [#allocation12]  }
  0x67   :  { %2978 = dma.done.wait [#allocation3], 57344  }
  0x68   :  { %2979 = vsyncadd [#allocation3], 4294909952 }
  0x69   :  { %2980 = dma.done.wait [#allocation6], 32832  }
  0x6a   :  { %2981 = vsyncadd [#allocation6], 4294934464 }
  0x6b   :  { %2982 = dma.done.wait [#allocation9], 8256  }
  0x6c   :  { %2983 = vsyncadd [#allocation9], 4294959040 }
  0x6d   :  { %2984 = dma.done.wait [#allocation12], 16  }
  0x6e   :  { %2985 = vsyncadd [#allocation12], 4294967280  ;;  %v111_v0 = vld [vmem:[#allocation2 + $0x8] sm:$0xff]  ;;  %v113_v2 = vld [vmem:[#allocation2 + $0x18] sm:$0xff] }
  0x6f   :  { %v115_v1 = vld [vmem:[#allocation2 + $0x28] sm:$0xff]  ;;  %v117_v4 = vld [vmem:[#allocation2 + $0x38] sm:$0xff]  ;;  %v110_v5 = vld [vmem:[#allocation2] sm:$0xff] }
  0x70   :  { %v2020_v3 = vpack.c.bf16 %v115_v1, %v111_v0  ;;  %v114_v6 = vld [vmem:[#allocation2 + $0x20] sm:$0xff]  ;;  %v2244_v7 = vpack.c.bf16 %v117_v4, %v113_v2  ;;  %v112_v9 = vld [vmem:[#allocation2 + $0x10] sm:$0xff]  ;;  %v119_v11 = vld [vmem:[#allocation2 + $0x48] sm:$0xff] }
  0x71   :  { %v2022_v8 = vpack.c.bf16 %v114_v6, %v110_v5  ;;  %v116_v10 = vld [vmem:[#allocation2 + $0x30] sm:$0xff]  ;;  %v123_v13 = vld [vmem:[#allocation2 + $0x68] sm:$0xff]  ;;  %v121_v14 = vld [vmem:[#allocation2 + $0x58] sm:$0xff] }
  0x72   :  { %2021 = vmatprep.subr.bf16.mxu0 %v2020_v3  ;;  %v2246_v12 = vpack.c.bf16 %v116_v10, %v112_v9  ;;  %v125_v15 = vld [vmem:[#allocation2 + $0x78] sm:$0xff]  ;;  %2245 = vmatprep.subr.bf16.mxu1 %v2244_v7  ;;  %v2024_v16 = vpack.c.bf16 %v123_v13, %v119_v11  ;;  %v118_v18 = vld [vmem:[#allocation2 + $0x40] sm:$0xff]  ;;  %v120_v20 = vld [vmem:[#allocation2 + $0x50] sm:$0xff] }
  0x73   :  { %2023 = vmatpush1.bf16.msra.mxu0 %v2022_v8  ;;  %v2248_v17 = vpack.c.bf16 %v125_v15, %v121_v14  ;;  %v122_v19 = vld [vmem:[#allocation2 + $0x60] sm:$0xff]  ;;  %v124_v22 = vld [vmem:[#allocation2 + $0x70] sm:$0xff]  ;;  %v127_v23 = vld [vmem:[#allocation2 + $0x88] sm:$0xff] }
  0x74   :  { %2247 = vmatpush1.bf16.msra.mxu1 %v2246_v12  ;;  %v2026_v21 = vpack.c.bf16 %v122_v19, %v118_v18  ;;  %v131_v24 = vld [vmem:[#allocation2 + $0xa8] sm:$0xff]  ;;  %2025 = vmatprep.subr.bf16.mxu0 %v2024_v16  ;;  %v2250_v25 = vpack.c.bf16 %v124_v22, %v120_v20  ;;  %v129_v27 = vld [vmem:[#allocation2 + $0x98] sm:$0xff]  ;;  %v126_v29 = vld [vmem:[#allocation2 + $0x80] sm:$0xff] }
  0x75   :  { %2249 = vmatprep.subr.bf16.mxu1 %v2248_v17  ;;  %v2028_v26 = vpack.c.bf16 %v131_v24, %v127_v23  ;;  %v133_v28 = vld [vmem:[#allocation2 + $0xb8] sm:$0xff]  ;;  %v130_v31 = vld [vmem:[#allocation2 + $0xa0] sm:$0xff]  ;;  %v128_v32 = vld [vmem:[#allocation2 + $0x90] sm:$0xff] }
  0x76   :  { %v2252_v30 = vpack.c.bf16 %v133_v28, %v129_v27  ;;  %v132_v33 = vld [vmem:[#allocation2 + $0xb0] sm:$0xff]  ;;  %v2030_v34 = vpack.c.bf16 %v130_v31, %v126_v29  ;;  %v135_v35 = vld [vmem:[#allocation2 + $0xc8] sm:$0xff]  ;;  %v137_v37 = vld [vmem:[#allocation2 + $0xd8] sm:$0xff] }
  0x77   :  { %2027 = vmatpush1.bf16.msra.mxu0 %v2026_v21  ;;  %v139_v36 = vld [vmem:[#allocation2 + $0xe8] sm:$0xff]  ;;  %v2254_v38 = vpack.c.bf16 %v132_v33, %v128_v32  ;;  %v141_v40 = vld [vmem:[#allocation2 + $0xf8] sm:$0xff]  ;;  %v134_v41 = vld [vmem:[#allocation2 + $0xc0] sm:$0xff] }
  0x78   :  { %2251 = vmatpush1.bf16.msra.mxu1 %v2250_v25  ;;  %2029 = vmatprep.subr.bf16.mxu0 %v2028_v26  ;;  %v2032_v39 = vpack.c.bf16 %v139_v36, %v135_v35  ;;  %v138_v42 = vld [vmem:[#allocation2 + $0xe0] sm:$0xff]  ;;  %v2256_v43 = vpack.c.bf16 %v141_v40, %v137_v37  ;;  %v136_v44 = vld [vmem:[#allocation2 + $0xd0] sm:$0xff]  ;;  %v143_v46 = vld [vmem:[#allocation2 + $0x108] sm:$0xff] }
  0x79   :  { %2253 = vmatprep.subr.bf16.mxu1 %v2252_v30  ;;  %v140_v45 = vld [vmem:[#allocation2 + $0xf0] sm:$0xff]  ;;  %v147_v47 = vld [vmem:[#allocation2 + $0x128] sm:$0xff]  ;;  %v145_v48 = vld [vmem:[#allocation2 + $0x118] sm:$0xff]  ;;  %v2034_v50 = vpack.c.bf16 %v138_v42, %v134_v41 }
  0x7a   :  { %v149_v49 = vld [vmem:[#allocation2 + $0x138] sm:$0xff]  ;;  %v2258_v51 = vpack.c.bf16 %v140_v45, %v136_v44  ;;  %v2036_v52 = vpack.c.bf16 %v147_v47, %v143_v46  ;;  %v142_v53 = vld [vmem:[#allocation2 + $0x100] sm:$0xff]  ;;  %v144_v55 = vld [vmem:[#allocation2 + $0x110] sm:$0xff] }
  0x7b   :  { %2031 = vmatpush1.bf16.msra.mxu0 %v2030_v34  ;;  %v146_v54 = vld [vmem:[#allocation2 + $0x120] sm:$0xff]  ;;  %v2260_v56 = vpack.c.bf16 %v149_v49, %v145_v48  ;;  %v148_v57 = vld [vmem:[#allocation2 + $0x130] sm:$0xff]  ;;  %v151_v58 = vld [vmem:[#allocation2 + $0x148] sm:$0xff] }
  0x7c   :  { %2255 = vmatpush1.bf16.msra.mxu1 %v2254_v38  ;;  %2033 = vmatprep.subr.bf16.mxu0 %v2032_v39  ;;  %v155_v59 = vld [vmem:[#allocation2 + $0x168] sm:$0xff]  ;;  %v153_v60 = vld [vmem:[#allocation2 + $0x158] sm:$0xff]  ;;  %v2038_v62 = vpack.c.bf16 %v146_v54, %v142_v53  ;;  %v2262_v63 = vpack.c.bf16 %v148_v57, %v144_v55  ;;  %v150_v1 = vld [vmem:[#allocation2 + $0x140] sm:$0xff] }
  0x7d   :  { %2257 = vmatprep.subr.bf16.mxu1 %v2256_v43  ;;  %v157_v61 = vld [vmem:[#allocation2 + $0x178] sm:$0xff]  ;;  %v2040_v0 = vpack.c.bf16 %v155_v59, %v151_v58  ;;  %v154_v2 = vld [vmem:[#allocation2 + $0x160] sm:$0xff]  ;;  %v152_v3 = vld [vmem:[#allocation2 + $0x150] sm:$0xff] }
  0x7e   :  { %v2264_v4 = vpack.c.bf16 %v157_v61, %v153_v60  ;;  %v156_v5 = vld [vmem:[#allocation2 + $0x170] sm:$0xff]  ;;  %v159_v6 = vld [vmem:[#allocation2 + $0x188] sm:$0xff]  ;;  %v161_v8 = vld [vmem:[#allocation2 + $0x198] sm:$0xff]  ;;  %v2042_v10 = vpack.c.bf16 %v154_v2, %v150_v1 }
  0x7f   :  { %2035 = vmatpush1.bf16.msra.mxu0 %v2034_v50  ;;  %v163_v7 = vld [vmem:[#allocation2 + $0x1a8] sm:$0xff]  ;;  %v165_v9 = vld [vmem:[#allocation2 + $0x1b8] sm:$0xff]  ;;  %v2266_v11 = vpack.c.bf16 %v156_v5, %v152_v3  ;;  %v158_v13 = vld [vmem:[#allocation2 + $0x180] sm:$0xff] }
  0x80   :  { %2259 = vmatpush1.bf16.msra.mxu1 %v2258_v51  ;;  %2037 = vmatprep.subr.bf16.mxu0 %v2036_v52  ;;  %v2044_v12 = vpack.c.bf16 %v163_v7, %v159_v6  ;;  %v162_v14 = vld [vmem:[#allocation2 + $0x1a0] sm:$0xff]  ;;  %v160_v15 = vld [vmem:[#allocation2 + $0x190] sm:$0xff]  ;;  %v2268_v16 = vpack.c.bf16 %v165_v9, %v161_v8  ;;  %v167_v18 = vld [vmem:[#allocation2 + $0x1c8] sm:$0xff] }
  0x81   :  { %2261 = vmatprep.subr.bf16.mxu1 %v2260_v56  ;;  %v164_v17 = vld [vmem:[#allocation2 + $0x1b0] sm:$0xff]  ;;  %v171_v19 = vld [vmem:[#allocation2 + $0x1e8] sm:$0xff]  ;;  %v169_v20 = vld [vmem:[#allocation2 + $0x1d8] sm:$0xff]  ;;  %v2046_v22 = vpack.c.bf16 %v162_v14, %v158_v13 }
  0x82   :  { %v173_v21 = vld [vmem:[#allocation2 + $0x1f8] sm:$0xff]  ;;  %v2270_v23 = vpack.c.bf16 %v164_v17, %v160_v15  ;;  %v2048_v24 = vpack.c.bf16 %v171_v19, %v167_v18  ;;  %v166_v25 = vld [vmem:[#allocation2 + $0x1c0] sm:$0xff]  ;;  %v168_v27 = vld [vmem:[#allocation2 + $0x1d0] sm:$0xff] }
  0x83   :  { %2039 = vmatpush1.bf16.msra.mxu0 %v2038_v62  ;;  %v170_v26 = vld [vmem:[#allocation2 + $0x1e0] sm:$0xff]  ;;  %v2272_v28 = vpack.c.bf16 %v173_v21, %v169_v20  ;;  %v172_v29 = vld [vmem:[#allocation2 + $0x1f0] sm:$0xff]  ;;  %v175_v30 = vld [vmem:[#allocation2 + $0x208] sm:$0xff] }
  0x84   :  { %2263 = vmatpush1.bf16.msra.mxu1 %v2262_v63  ;;  %2041 = vmatprep.subr.bf16.mxu0 %v2040_v0  ;;  %v179_v31 = vld [vmem:[#allocation2 + $0x228] sm:$0xff]  ;;  %v177_v32 = vld [vmem:[#allocation2 + $0x218] sm:$0xff]  ;;  %v2050_v34 = vpack.c.bf16 %v170_v26, %v166_v25  ;;  %v2274_v35 = vpack.c.bf16 %v172_v29, %v168_v27  ;;  %v174_v37 = vld [vmem:[#allocation2 + $0x200] sm:$0xff] }
  0x85   :  { %2265 = vmatprep.subr.bf16.mxu1 %v2264_v4  ;;  %v181_v33 = vld [vmem:[#allocation2 + $0x238] sm:$0xff]  ;;  %v2052_v36 = vpack.c.bf16 %v179_v31, %v175_v30  ;;  %v178_v38 = vld [vmem:[#allocation2 + $0x220] sm:$0xff]  ;;  %v176_v39 = vld [vmem:[#allocation2 + $0x210] sm:$0xff] }
  0x86   :  { %v2276_v40 = vpack.c.bf16 %v181_v33, %v177_v32  ;;  %v180_v41 = vld [vmem:[#allocation2 + $0x230] sm:$0xff]  ;;  %v183_v42 = vld [vmem:[#allocation2 + $0x248] sm:$0xff]  ;;  %v185_v44 = vld [vmem:[#allocation2 + $0x258] sm:$0xff]  ;;  %v2054_v46 = vpack.c.bf16 %v178_v38, %v174_v37 }
  0x87   :  { %2043 = vmatpush1.bf16.msra.mxu0 %v2042_v10  ;;  %v187_v43 = vld [vmem:[#allocation2 + $0x268] sm:$0xff]  ;;  %v189_v45 = vld [vmem:[#allocation2 + $0x278] sm:$0xff]  ;;  %v2278_v47 = vpack.c.bf16 %v180_v41, %v176_v39  ;;  %v182_v49 = vld [vmem:[#allocation2 + $0x240] sm:$0xff] }
  0x88   :  { %2267 = vmatpush1.bf16.msra.mxu1 %v2266_v11  ;;  %2045 = vmatprep.subr.bf16.mxu0 %v2044_v12  ;;  %v2056_v48 = vpack.c.bf16 %v187_v43, %v183_v42  ;;  %v186_v50 = vld [vmem:[#allocation2 + $0x260] sm:$0xff]  ;;  %v184_v51 = vld [vmem:[#allocation2 + $0x250] sm:$0xff]  ;;  %v2280_v52 = vpack.c.bf16 %v189_v45, %v185_v44  ;;  %v191_v54 = vld [vmem:[#allocation2 + $0x288] sm:$0xff] }
  0x89   :  { %2269 = vmatprep.subr.bf16.mxu1 %v2268_v16  ;;  %v188_v53 = vld [vmem:[#allocation2 + $0x270] sm:$0xff]  ;;  %v195_v55 = vld [vmem:[#allocation2 + $0x2a8] sm:$0xff]  ;;  %v193_v56 = vld [vmem:[#allocation2 + $0x298] sm:$0xff]  ;;  %v2058_v58 = vpack.c.bf16 %v186_v50, %v182_v49 }
  0x8a   :  { %v197_v57 = vld [vmem:[#allocation2 + $0x2b8] sm:$0xff]  ;;  %v2282_v59 = vpack.c.bf16 %v188_v53, %v184_v51  ;;  %v2060_v60 = vpack.c.bf16 %v195_v55, %v191_v54  ;;  %v190_v61 = vld [vmem:[#allocation2 + $0x280] sm:$0xff]  ;;  %v192_v63 = vld [vmem:[#allocation2 + $0x290] sm:$0xff] }
  0x8b   :  { %2047 = vmatpush1.bf16.msra.mxu0 %v2046_v22  ;;  %v194_v62 = vld [vmem:[#allocation2 + $0x2a0] sm:$0xff]  ;;  %v2284_v0 = vpack.c.bf16 %v197_v57, %v193_v56  ;;  %v196_v1 = vld [vmem:[#allocation2 + $0x2b0] sm:$0xff]  ;;  %v199_v2 = vld [vmem:[#allocation2 + $0x2c8] sm:$0xff] }
  0x8c   :  { %2271 = vmatpush1.bf16.msra.mxu1 %v2270_v23  ;;  %2049 = vmatprep.subr.bf16.mxu0 %v2048_v24  ;;  %v203_v3 = vld [vmem:[#allocation2 + $0x2e8] sm:$0xff]  ;;  %v201_v4 = vld [vmem:[#allocation2 + $0x2d8] sm:$0xff]  ;;  %v2062_v6 = vpack.c.bf16 %v194_v62, %v190_v61  ;;  %v198_v7 = vld [vmem:[#allocation2 + $0x2c0] sm:$0xff]  ;;  %v2286_v8 = vpack.c.bf16 %v196_v1, %v192_v63 }
  0x8d   :  { %2273 = vmatprep.subr.bf16.mxu1 %v2272_v28  ;;  %v205_v5 = vld [vmem:[#allocation2 + $0x2f8] sm:$0xff]  ;;  %v2064_v9 = vpack.c.bf16 %v203_v3, %v199_v2  ;;  %v202_v10 = vld [vmem:[#allocation2 + $0x2e0] sm:$0xff]  ;;  %v200_v11 = vld [vmem:[#allocation2 + $0x2d0] sm:$0xff] }
  0x8e   :  { %v204_v12 = vld [vmem:[#allocation2 + $0x2f0] sm:$0xff]  ;;  %v2288_v13 = vpack.c.bf16 %v205_v5, %v201_v4  ;;  %v207_v14 = vld [vmem:[#allocation2 + $0x308] sm:$0xff]  ;;  %v209_v17 = vld [vmem:[#allocation2 + $0x318] sm:$0xff]  ;;  %v2066_v19 = vpack.c.bf16 %v202_v10, %v198_v7 }
  0x8f   :  { %2051 = vmatpush1.bf16.msra.mxu0 %v2050_v34  ;;  %v211_v15 = vld [vmem:[#allocation2 + $0x328] sm:$0xff]  ;;  %v213_v18 = vld [vmem:[#allocation2 + $0x338] sm:$0xff]  ;;  %v2290_v20 = vpack.c.bf16 %v204_v12, %v200_v11  ;;  %v206_v22 = vld [vmem:[#allocation2 + $0x300] sm:$0xff] }
  0x90   :  { %2275 = vmatpush1.bf16.msra.mxu1 %v2274_v35  ;;  %2053 = vmatprep.subr.bf16.mxu0 %v2052_v36  ;;  %v104_v16 = vld [vmem:[%s3176_s0 + $0x8] sm:$0xff]  ;;  %v2068_v21 = vpack.c.bf16 %v211_v15, %v207_v14  ;;  %v210_v23 = vld [vmem:[#allocation2 + $0x320] sm:$0xff]  ;;  %v208_v24 = vld [vmem:[#allocation2 + $0x310] sm:$0xff]  ;;  %v2292_v25 = vpack.c.bf16 %v213_v18, %v209_v17 }
  0x91   :  { %2277 = vmatprep.subr.bf16.mxu1 %v2276_v40  ;;  %644 = vmatprep.mubr.f32.mxu0 %v104_v16  ;;  %v212_v26 = vld [vmem:[#allocation2 + $0x330] sm:$0xff]  ;;  %v215_v27 = vld [vmem:[#allocation2 + $0x348] sm:$0xff]  ;;  %v217_v29 = vld [vmem:[#allocation2 + $0x358] sm:$0xff]  ;;  %v2070_v31 = vpack.c.bf16 %v210_v23, %v206_v22 }
  0x92   :  { %928 = vmatprep.mubr.f32.mxu1 %v104_v16  ;;  %v219_v28 = vld [vmem:[#allocation2 + $0x368] sm:$0xff]  ;;  %v221_v30 = vld [vmem:[#allocation2 + $0x378] sm:$0xff]  ;;  %v2294_v32 = vpack.c.bf16 %v212_v26, %v208_v24  ;;  %v214_v34 = vld [vmem:[#allocation2 + $0x340] sm:$0xff] }
  0x93   :  { %2055 = vmatpush1.bf16.msra.mxu0 %v2054_v46  ;;  %v2072_v33 = vpack.c.bf16 %v219_v28, %v215_v27  ;;  %v218_v35 = vld [vmem:[#allocation2 + $0x360] sm:$0xff]  ;;  %v216_v36 = vld [vmem:[#allocation2 + $0x350] sm:$0xff]  ;;  %v2296_v37 = vpack.c.bf16 %v221_v30, %v217_v29  ;;  %v223_v39 = vld [vmem:[#allocation2 + $0x388] sm:$0xff] }
  0x94   :  { %2279 = vmatpush1.bf16.msra.mxu1 %v2278_v47  ;;  %2057 = vmatprep.subr.bf16.mxu0 %v2056_v48  ;;  %v220_v38 = vld [vmem:[#allocation2 + $0x370] sm:$0xff]  ;;  %v227_v40 = vld [vmem:[#allocation2 + $0x3a8] sm:$0xff]  ;;  %v225_v41 = vld [vmem:[#allocation2 + $0x398] sm:$0xff]  ;;  %v2074_v43 = vpack.c.bf16 %v218_v35, %v214_v34 }
  0x95   :  { %2281 = vmatprep.subr.bf16.mxu1 %v2280_v52  ;;  %v229_v42 = vld [vmem:[#allocation2 + $0x3b8] sm:$0xff]  ;;  %v2298_v44 = vpack.c.bf16 %v220_v38, %v216_v36  ;;  %v2076_v45 = vpack.c.bf16 %v227_v40, %v223_v39  ;;  %v222_v46 = vld [vmem:[#allocation2 + $0x380] sm:$0xff]  ;;  %v224_v48 = vld [vmem:[#allocation2 + $0x390] sm:$0xff] }
  0x96   :  { %v226_v47 = vld [vmem:[#allocation2 + $0x3a0] sm:$0xff]  ;;  %v2300_v49 = vpack.c.bf16 %v229_v42, %v225_v41  ;;  %v228_v50 = vld [vmem:[#allocation2 + $0x3b0] sm:$0xff]  ;;  %v231_v51 = vld [vmem:[#allocation2 + $0x3c8] sm:$0xff] }
  0x97   :  { %2059 = vmatpush1.bf16.msra.mxu0 %v2058_v58  ;;  %v235_v52 = vld [vmem:[#allocation2 + $0x3e8] sm:$0xff]  ;;  %v233_v53 = vld [vmem:[#allocation2 + $0x3d8] sm:$0xff]  ;;  %v2078_v55 = vpack.c.bf16 %v226_v47, %v222_v46  ;;  %v2302_v56 = vpack.c.bf16 %v228_v50, %v224_v48  ;;  %v230_v58 = vld [vmem:[#allocation2 + $0x3c0] sm:$0xff] }
  0x98   :  { %2283 = vmatpush1.bf16.msra.mxu1 %v2282_v59  ;;  %2061 = vmatprep.subr.bf16.mxu0 %v2060_v60  ;;  %v237_v54 = vld [vmem:[#allocation2 + $0x3f8] sm:$0xff]  ;;  %v2080_v57 = vpack.c.bf16 %v235_v52, %v231_v51  ;;  %v234_v59 = vld [vmem:[#allocation2 + $0x3e0] sm:$0xff]  ;;  %v232_v60 = vld [vmem:[#allocation2 + $0x3d0] sm:$0xff] }
  0x99   :  { %2285 = vmatprep.subr.bf16.mxu1 %v2284_v0  ;;  %v2304_v61 = vpack.c.bf16 %v237_v54, %v233_v53  ;;  %v236_v62 = vld [vmem:[#allocation2 + $0x3f0] sm:$0xff]  ;;  %v239_v63 = vld [vmem:[#allocation2 + $0x408] sm:$0xff]  ;;  %v241_v1 = vld [vmem:[#allocation2 + $0x418] sm:$0xff]  ;;  %v2082_v3 = vpack.c.bf16 %v234_v59, %v230_v58 }
  0x9a   :  { %v243_v0 = vld [vmem:[#allocation2 + $0x428] sm:$0xff]  ;;  %v245_v2 = vld [vmem:[#allocation2 + $0x438] sm:$0xff]  ;;  %v2306_v4 = vpack.c.bf16 %v236_v62, %v232_v60  ;;  %v242_v7 = vld [vmem:[#allocation2 + $0x420] sm:$0xff] }
  0x9b   :  { %2063 = vmatpush1.bf16.msra.mxu0 %v2062_v6  ;;  %v2084_v5 = vpack.c.bf16 %v243_v0, %v239_v63  ;;  %v238_v6 = vld [vmem:[#allocation2 + $0x400] sm:$0xff]  ;;  %v244_v10 = vld [vmem:[#allocation2 + $0x430] sm:$0xff]  ;;  %v247_v11 = vld [vmem:[#allocation2 + $0x448] sm:$0xff] }
  0x9c   :  { %2287 = vmatpush1.bf16.msra.mxu1 %v2286_v8  ;;  %2065 = vmatprep.subr.bf16.mxu0 %v2064_v9  ;;  %v240_v8 = vld [vmem:[#allocation2 + $0x410] sm:$0xff]  ;;  %v2308_v9 = vpack.c.bf16 %v245_v2, %v241_v1  ;;  %v251_v12 = vld [vmem:[#allocation2 + $0x468] sm:$0xff]  ;;  %v253_v14 = vld [vmem:[#allocation2 + $0x478] sm:$0xff]  ;;  %v2086_v16 = vpack.c.bf16 %v242_v7, %v238_v6 }
  0x9d   :  { %2289 = vmatprep.subr.bf16.mxu1 %v2288_v13  ;;  %v249_v13 = vld [vmem:[#allocation2 + $0x458] sm:$0xff]  ;;  %v103_v15 = vld [vmem:[%s3176_s0] sm:$0xff]  ;;  %v2310_v17 = vpack.c.bf16 %v244_v10, %v240_v8  ;;  %v2088_v18 = vpack.c.bf16 %v251_v12, %v247_v11  ;;  %v252_v23 = vld [vmem:[#allocation2 + $0x470] sm:$0xff] }
  0x9e   :  { %v2312_v22 = vpack.c.bf16 %v253_v14, %v249_v13  ;;  %v255_v24 = vld [vmem:[#allocation2 + $0x488] sm:$0xff]  ;;  %v257_v26 = vld [vmem:[#allocation2 + $0x498] sm:$0xff]  ;;  %v260_v35 = vld [vmem:[#allocation2 + $0x4b0] sm:$0xff] }
  0x9f   :  { %2067 = vmatpush1.bf16.msra.mxu0 %v2066_v19  ;;  %v246_v19 = vld [vmem:[#allocation2 + $0x440] sm:$0xff]  ;;  %v261_v27 = vld [vmem:[#allocation2 + $0x4b8] sm:$0xff]  ;;  %v263_v36 = vld [vmem:[#allocation2 + $0x4c8] sm:$0xff] }
  0xa0   :  { %2291 = vmatpush1.bf16.msra.mxu1 %v2290_v20  ;;  %2069 = vmatprep.subr.bf16.mxu0 %v2068_v21  ;;  %v250_v20 = vld [vmem:[#allocation2 + $0x460] sm:$0xff]  ;;  %v248_v21 = vld [vmem:[#allocation2 + $0x450] sm:$0xff]  ;;  %v2316_v34 = vpack.c.bf16 %v261_v27, %v257_v26  ;;  %v265_v38 = vld [vmem:[#allocation2 + $0x4d8] sm:$0xff] }
  0xa1   :  { %2293 = vmatprep.subr.bf16.mxu1 %v2292_v25  ;;  %v259_v25 = vld [vmem:[#allocation2 + $0x4a8] sm:$0xff]  ;;  %v2090_v28 = vpack.c.bf16 %v250_v20, %v246_v19  ;;  %v2314_v29 = vpack.c.bf16 %v252_v23, %v248_v21  ;;  %v269_v39 = vld [vmem:[#allocation2 + $0x4f8] sm:$0xff]  ;;  %v268_v47 = vld [vmem:[#allocation2 + $0x4f0] sm:$0xff] }
  0xa2   :  { %v2092_v30 = vpack.c.bf16 %v259_v25, %v255_v24  ;;  %v2320_v46 = vpack.c.bf16 %v269_v39, %v265_v38  ;;  %v271_v48 = vld [vmem:[#allocation2 + $0x508] sm:$0xff]  ;;  %v273_v50 = vld [vmem:[#allocation2 + $0x518] sm:$0xff]  ;;  %v276_v59 = vld [vmem:[#allocation2 + $0x530] sm:$0xff] }
  0xa3   :  { %2071 = vmatpush1.bf16.msra.mxu0 %v2070_v31  ;;  %v254_v31 = vld [vmem:[#allocation2 + $0x480] sm:$0xff]  ;;  %v277_v51 = vld [vmem:[#allocation2 + $0x538] sm:$0xff]  ;;  %v279_v60 = vld [vmem:[#allocation2 + $0x548] sm:$0xff] }
  0xa4   :  { %2295 = vmatpush1.bf16.msra.mxu1 %v2294_v32  ;;  %2073 = vmatprep.subr.bf16.mxu0 %v2072_v33  ;;  %v258_v32 = vld [vmem:[#allocation2 + $0x4a0] sm:$0xff]  ;;  %v256_v33 = vld [vmem:[#allocation2 + $0x490] sm:$0xff]  ;;  %v2324_v58 = vpack.c.bf16 %v277_v51, %v273_v50  ;;  %v281_v62 = vld [vmem:[#allocation2 + $0x558] sm:$0xff] }
  0xa5   :  { %2297 = vmatprep.subr.bf16.mxu1 %v2296_v37  ;;  %v267_v37 = vld [vmem:[#allocation2 + $0x4e8] sm:$0xff]  ;;  %v2094_v40 = vpack.c.bf16 %v258_v32, %v254_v31  ;;  %v2318_v41 = vpack.c.bf16 %v260_v35, %v256_v33  ;;  %v285_v63 = vld [vmem:[#allocation2 + $0x578] sm:$0xff]  ;;  %v284_v7 = vld [vmem:[#allocation2 + $0x570] sm:$0xff] }
  0xa6   :  { %v2096_v42 = vpack.c.bf16 %v267_v37, %v263_v36  ;;  %v2328_v6 = vpack.c.bf16 %v285_v63, %v281_v62  ;;  %v287_v8 = vld [vmem:[#allocation2 + $0x588] sm:$0xff]  ;;  %v289_v10 = vld [vmem:[#allocation2 + $0x598] sm:$0xff]  ;;  %v286_v13 = vld [vmem:[#allocation2 + $0x580] sm:$0xff] }
  0xa7   :  { %2075 = vmatpush1.bf16.msra.mxu0 %v2074_v43  ;;  %v262_v43 = vld [vmem:[#allocation2 + $0x4c0] sm:$0xff]  ;;  %v293_v11 = vld [vmem:[#allocation2 + $0x5b8] sm:$0xff]  ;;  %v295_v20 = vld [vmem:[#allocation2 + $0x5c8] sm:$0xff] }
  0xa8   :  { %2299 = vmatpush1.bf16.msra.mxu1 %v2298_v44  ;;  %2077 = vmatprep.subr.bf16.mxu0 %v2076_v45  ;;  %v266_v44 = vld [vmem:[#allocation2 + $0x4e0] sm:$0xff]  ;;  %v264_v45 = vld [vmem:[#allocation2 + $0x4d0] sm:$0xff]  ;;  %v2332_v19 = vpack.c.bf16 %v293_v11, %v289_v10  ;;  %v299_v21 = vld [vmem:[#allocation2 + $0x5e8] sm:$0xff] }
  0xa9   :  { %2301 = vmatprep.subr.bf16.mxu1 %v2300_v49  ;;  %v275_v49 = vld [vmem:[#allocation2 + $0x528] sm:$0xff]  ;;  %v2098_v52 = vpack.c.bf16 %v266_v44, %v262_v43  ;;  %v2322_v53 = vpack.c.bf16 %v268_v47, %v264_v45  ;;  %v297_v23 = vld [vmem:[#allocation2 + $0x5d8] sm:$0xff]  ;;  %v2112_v27 = vpack.c.bf16 %v299_v21, %v295_v20  ;;  %v300_v32 = vld [vmem:[#allocation2 + $0x5f0] sm:$0xff] }
  0xaa   :  { %v2100_v54 = vpack.c.bf16 %v275_v49, %v271_v48  ;;  %v301_v24 = vld [vmem:[#allocation2 + $0x5f8] sm:$0xff]  ;;  %v303_v33 = vld [vmem:[#allocation2 + $0x608] sm:$0xff]  ;;  %v308_v44 = vld [vmem:[#allocation2 + $0x630] sm:$0xff] }
  0xab   :  { %2079 = vmatpush1.bf16.msra.mxu0 %v2078_v55  ;;  %v270_v55 = vld [vmem:[#allocation2 + $0x500] sm:$0xff]  ;;  %v2336_v31 = vpack.c.bf16 %v301_v24, %v297_v23  ;;  %v305_v35 = vld [vmem:[#allocation2 + $0x618] sm:$0xff]  ;;  %v311_v45 = vld [vmem:[#allocation2 + $0x648] sm:$0xff] }
  0xac   :  { %2303 = vmatpush1.bf16.msra.mxu1 %v2302_v56  ;;  %2081 = vmatprep.subr.bf16.mxu0 %v2080_v57  ;;  %v274_v56 = vld [vmem:[#allocation2 + $0x520] sm:$0xff]  ;;  %v272_v57 = vld [vmem:[#allocation2 + $0x510] sm:$0xff]  ;;  %v309_v36 = vld [vmem:[#allocation2 + $0x638] sm:$0xff] }
  0xad   :  { %2305 = vmatprep.subr.bf16.mxu1 %v2304_v61  ;;  %v283_v61 = vld [vmem:[#allocation2 + $0x568] sm:$0xff]  ;;  %v2102_v0 = vpack.c.bf16 %v274_v56, %v270_v55  ;;  %v2326_v1 = vpack.c.bf16 %v276_v59, %v272_v57  ;;  %v2340_v43 = vpack.c.bf16 %v309_v36, %v305_v35  ;;  %v313_v47 = vld [vmem:[#allocation2 + $0x658] sm:$0xff]  ;;  %v316_v56 = vld [vmem:[#allocation2 + $0x670] sm:$0xff] }
  0xae   :  { %v2104_v2 = vpack.c.bf16 %v283_v61, %v279_v60  ;;  %v317_v48 = vld [vmem:[#allocation2 + $0x678] sm:$0xff]  ;;  %v319_v57 = vld [vmem:[#allocation2 + $0x688] sm:$0xff]  ;;  %v334_v24 = vld [vmem:[#allocation2 + $0x700] sm:$0xff] }
  0xaf   :  { %2083 = vmatpush1.bf16.msra.mxu0 %v2082_v3  ;;  %v278_v3 = vld [vmem:[#allocation2 + $0x540] sm:$0xff]  ;;  %v2344_v55 = vpack.c.bf16 %v317_v48, %v313_v47  ;;  %v321_v59 = vld [vmem:[#allocation2 + $0x698] sm:$0xff] }
  0xb0   :  { %2307 = vmatpush1.bf16.msra.mxu1 %v2306_v4  ;;  %2085 = vmatprep.subr.bf16.mxu0 %v2084_v5  ;;  %v282_v4 = vld [vmem:[#allocation2 + $0x560] sm:$0xff]  ;;  %v280_v5 = vld [vmem:[#allocation2 + $0x550] sm:$0xff]  ;;  %v325_v60 = vld [vmem:[#allocation2 + $0x6b8] sm:$0xff] }
  0xb1   :  { %2309 = vmatprep.subr.bf16.mxu1 %v2308_v9  ;;  %v291_v9 = vld [vmem:[#allocation2 + $0x5a8] sm:$0xff]  ;;  %v2106_v12 = vpack.c.bf16 %v282_v4, %v278_v3  ;;  %v2330_v14 = vpack.c.bf16 %v284_v7, %v280_v5  ;;  %v2348_v3 = vpack.c.bf16 %v325_v60, %v321_v59  ;;  %v324_v4 = vld [vmem:[#allocation2 + $0x6b0] sm:$0xff]  ;;  %v329_v7 = vld [vmem:[#allocation2 + $0x6d8] sm:$0xff] }
  0xb2   :  { %645 = vmatmul.mubr.f32.vlgmr.msra.gmra.mrb[0].mxu0 %v103_v15  ;;  %v327_v5 = vld [vmem:[#allocation2 + $0x6c8] sm:$0xff]  ;;  %v341_v20 = vld [vmem:[#allocation2 + $0x738] sm:$0xff]  ;;  %v342_v36 = vld [vmem:[#allocation2 + $0x740] sm:$0xff] }
  0xb3   :  { %2087 = vmatpush1.bf16.msra.mxu0 %v2086_v16  ;;  %929 = vmatmul.mubr.f32.vlgmr.msra.gmra.mrb[0].mxu1 %v103_v15  ;;  %v2108_v15 = vpack.c.bf16 %v291_v9, %v287_v8  ;;  %v290_v16 = vld [vmem:[#allocation2 + $0x5a0] sm:$0xff]  ;;  %v333_v8 = vld [vmem:[#allocation2 + $0x6f8] sm:$0xff] }
  0xb4   :  { %2311 = vmatpush1.bf16.msra.mxu1 %v2310_v17  ;;  %2089 = vmatprep.subr.bf16.mxu0 %v2088_v18  ;;  %v288_v17 = vld [vmem:[#allocation2 + $0x590] sm:$0xff]  ;;  %v2110_v25 = vpack.c.bf16 %v290_v16, %v286_v13  ;;  %v330_v13 = vld [vmem:[#allocation2 + $0x6e0] sm:$0xff] }
  0xb5   :  { %2313 = vmatprep.subr.bf16.mxu1 %v2312_v22  ;;  %v292_v18 = vld [vmem:[#allocation2 + $0x5b0] sm:$0xff]  ;;  %v106_v22 = vld [vmem:[%s3176_s0 + $0x18] sm:$0xff]  ;;  %v350_v48 = vld [vmem:[#allocation2 + $0x780] sm:$0xff] }
  0xb6   :  { %715 = vmatprep.mubr.f32.mxu0 %v106_v22  ;;  %999 = vmatprep.mubr.f32.mxu1 %v106_v22  ;;  %v2334_v26 = vpack.c.bf16 %v292_v18, %v288_v17  ;;  %v332_v16 = vld [vmem:[#allocation2 + $0x6f0] sm:$0xff]  ;;  %v335_v17 = vld [vmem:[#allocation2 + $0x708] sm:$0xff]  ;;  %v358_v60 = vld [vmem:[#allocation2 + $0x7c0] sm:$0xff] }
  0xb7   :  { %2091 = vmatpush1.bf16.msra.mxu0 %v2090_v28  ;;  %v294_v28 = vld [vmem:[#allocation2 + $0x5c0] sm:$0xff]  ;;  %v339_v18 = vld [vmem:[#allocation2 + $0x728] sm:$0xff] }
  0xb8   :  { %2315 = vmatpush1.bf16.msra.mxu1 %v2314_v29  ;;  %2093 = vmatprep.subr.bf16.mxu0 %v2092_v30  ;;  %v298_v29 = vld [vmem:[#allocation2 + $0x5e0] sm:$0xff]  ;;  %v296_v30 = vld [vmem:[#allocation2 + $0x5d0] sm:$0xff]  ;;  %v2132_v23 = vpack.c.bf16 %v339_v18, %v335_v17 }
  0xb9   :  { %2317 = vmatprep.subr.bf16.mxu1 %v2316_v34  ;;  %v307_v34 = vld [vmem:[#allocation2 + $0x628] sm:$0xff]  ;;  %v2114_v37 = vpack.c.bf16 %v298_v29, %v294_v28  ;;  %v2338_v38 = vpack.c.bf16 %v300_v32, %v296_v30  ;;  %v340_v28 = vld [vmem:[#allocation2 + $0x730] sm:$0xff]  ;;  %v349_v32 = vld [vmem:[#allocation2 + $0x778] sm:$0xff] }
  0xba   :  { %v2116_v39 = vpack.c.bf16 %v307_v34, %v303_v33  ;;  %v343_v29 = vld [vmem:[#allocation2 + $0x748] sm:$0xff]  ;;  %v105_v17 = vld [vmem:[%s3176_s0 + $0x10] sm:$0xff] }
  0xbb   :  { %2095 = vmatpush1.bf16.msra.mxu0 %v2094_v40  ;;  %v302_v40 = vld [vmem:[#allocation2 + $0x600] sm:$0xff]  ;;  %v347_v30 = vld [vmem:[#allocation2 + $0x768] sm:$0xff] }
  0xbc   :  { %2319 = vmatpush1.bf16.msra.mxu1 %v2318_v41  ;;  %2097 = vmatprep.subr.bf16.mxu0 %v2096_v42  ;;  %v306_v41 = vld [vmem:[#allocation2 + $0x620] sm:$0xff]  ;;  %v304_v42 = vld [vmem:[#allocation2 + $0x610] sm:$0xff]  ;;  %v2136_v35 = vpack.c.bf16 %v347_v30, %v343_v29  ;;  %v389_v29 = vld [vmem:[#allocation2 + $0x8b8] sm:$0xff] }
  0xbd   :  { %2321 = vmatprep.subr.bf16.mxu1 %v2320_v46  ;;  %v315_v46 = vld [vmem:[#allocation2 + $0x668] sm:$0xff]  ;;  %v2118_v49 = vpack.c.bf16 %v306_v41, %v302_v40  ;;  %v2342_v50 = vpack.c.bf16 %v308_v44, %v304_v42  ;;  %v348_v40 = vld [vmem:[#allocation2 + $0x770] sm:$0xff]  ;;  %v357_v44 = vld [vmem:[#allocation2 + $0x7b8] sm:$0xff] }
  0xbe   :  { %v2120_v51 = vpack.c.bf16 %v315_v46, %v311_v45  ;;  %v351_v41 = vld [vmem:[#allocation2 + $0x788] sm:$0xff] }
  0xbf   :  { %2099 = vmatpush1.bf16.msra.mxu0 %v2098_v52  ;;  %v310_v52 = vld [vmem:[#allocation2 + $0x640] sm:$0xff]  ;;  %v355_v42 = vld [vmem:[#allocation2 + $0x7a8] sm:$0xff] }
  0xc0   :  { %2323 = vmatpush1.bf16.msra.mxu1 %v2322_v53  ;;  %2101 = vmatprep.subr.bf16.mxu0 %v2100_v54  ;;  %v314_v53 = vld [vmem:[#allocation2 + $0x660] sm:$0xff]  ;;  %v312_v54 = vld [vmem:[#allocation2 + $0x650] sm:$0xff]  ;;  %v2140_v47 = vpack.c.bf16 %v355_v42, %v351_v41  ;;  %v108_v30 = vld [vmem:[%s3176_s0 + $0x28] sm:$0xff] }
  0xc1   :  { %2325 = vmatprep.subr.bf16.mxu1 %v2324_v58  ;;  %v323_v58 = vld [vmem:[#allocation2 + $0x6a8] sm:$0xff]  ;;  %v2122_v61 = vpack.c.bf16 %v314_v53, %v310_v52  ;;  %v2346_v62 = vpack.c.bf16 %v316_v56, %v312_v54  ;;  %v356_v52 = vld [vmem:[#allocation2 + $0x7b0] sm:$0xff]  ;;  %v365_v56 = vld [vmem:[#allocation2 + $0x7f8] sm:$0xff] }
  0xc2   :  { %v2124_v63 = vpack.c.bf16 %v323_v58, %v319_v57  ;;  %v359_v53 = vld [vmem:[#allocation2 + $0x7c8] sm:$0xff]  ;;  %v393_v41 = vld [vmem:[#allocation2 + $0x8d8] sm:$0xff] }
  0xc3   :  { %2103 = vmatpush1.bf16.msra.mxu0 %v2102_v0  ;;  %v318_v0 = vld [vmem:[#allocation2 + $0x680] sm:$0xff]  ;;  %v363_v54 = vld [vmem:[#allocation2 + $0x7e8] sm:$0xff]  ;;  %v397_v42 = vld [vmem:[#allocation2 + $0x8f8] sm:$0xff] }
  0xc4   :  { %2327 = vmatpush1.bf16.msra.mxu1 %v2326_v1  ;;  %2105 = vmatprep.subr.bf16.mxu0 %v2104_v2  ;;  %v322_v1 = vld [vmem:[#allocation2 + $0x6a0] sm:$0xff]  ;;  %v320_v2 = vld [vmem:[#allocation2 + $0x690] sm:$0xff]  ;;  %v2144_v59 = vpack.c.bf16 %v363_v54, %v359_v53  ;;  %v401_v53 = vld [vmem:[#allocation2 + $0x918] sm:$0xff] }
  0xc5   :  { %2329 = vmatprep.subr.bf16.mxu1 %v2328_v6  ;;  %v331_v6 = vld [vmem:[#allocation2 + $0x6e8] sm:$0xff]  ;;  %v2126_v9 = vpack.c.bf16 %v322_v1, %v318_v0  ;;  %v2350_v10 = vpack.c.bf16 %v324_v4, %v320_v2  ;;  %v364_v0 = vld [vmem:[#allocation2 + $0x7f0] sm:$0xff]  ;;  %v373_v4 = vld [vmem:[#allocation2 + $0x838] sm:$0xff] }
  0xc6   :  { %v2128_v11 = vpack.c.bf16 %v331_v6, %v327_v5  ;;  %v367_v1 = vld [vmem:[#allocation2 + $0x808] sm:$0xff]  ;;  %v405_v54 = vld [vmem:[#allocation2 + $0x938] sm:$0xff] }
  0xc7   :  { %2107 = vmatpush1.bf16.msra.mxu0 %v2106_v12  ;;  %v326_v12 = vld [vmem:[#allocation2 + $0x6c0] sm:$0xff]  ;;  %v371_v2 = vld [vmem:[#allocation2 + $0x828] sm:$0xff] }
  0xc8   :  { %2331 = vmatpush1.bf16.msra.mxu1 %v2330_v14  ;;  %2109 = vmatprep.subr.bf16.mxu0 %v2108_v15  ;;  %v328_v14 = vld [vmem:[#allocation2 + $0x6d0] sm:$0xff]  ;;  %v2352_v15 = vpack.c.bf16 %v333_v8, %v329_v7  ;;  %v2130_v21 = vpack.c.bf16 %v330_v13, %v326_v12  ;;  %v2148_v7 = vpack.c.bf16 %v371_v2, %v367_v1  ;;  %v366_v8 = vld [vmem:[#allocation2 + $0x800] sm:$0xff]  ;;  %v375_v13 = vld [vmem:[#allocation2 + $0x848] sm:$0xff] }
  0xc9   :  { %2333 = vmatprep.subr.bf16.mxu1 %v2332_v19  ;;  %v337_v19 = vld [vmem:[#allocation2 + $0x718] sm:$0xff]  ;;  %v2354_v22 = vpack.c.bf16 %v332_v16, %v328_v14  ;;  %v372_v12 = vld [vmem:[#allocation2 + $0x830] sm:$0xff]  ;;  %v379_v14 = vld [vmem:[#allocation2 + $0x868] sm:$0xff] }
  0xca   :  { %v381_v16 = vld [vmem:[#allocation2 + $0x878] sm:$0xff] }
  0xcb   :  { %2111 = vmatpush1.bf16.msra.mxu0 %v2110_v25  ;;  %v338_v25 = vld [vmem:[#allocation2 + $0x720] sm:$0xff]  ;;  %v409_v1 = vld [vmem:[#allocation2 + $0x958] sm:$0xff] }
  0xcc   :  { %2335 = vmatpush1.bf16.msra.mxu1 %v2334_v26  ;;  %2113 = vmatprep.subr.bf16.mxu0 %v2112_v27  ;;  %v336_v26 = vld [vmem:[#allocation2 + $0x710] sm:$0xff]  ;;  %v2356_v27 = vpack.c.bf16 %v341_v20, %v337_v19  ;;  %v2134_v33 = vpack.c.bf16 %v338_v25, %v334_v24  ;;  %v2152_v20 = vpack.c.bf16 %v379_v14, %v375_v13  ;;  %v413_v2 = vld [vmem:[#allocation2 + $0x978] sm:$0xff] }
  0xcd   :  { %2337 = vmatprep.subr.bf16.mxu1 %v2336_v31  ;;  %v345_v31 = vld [vmem:[#allocation2 + $0x758] sm:$0xff]  ;;  %v2358_v34 = vpack.c.bf16 %v340_v28, %v336_v26  ;;  %v380_v25 = vld [vmem:[#allocation2 + $0x870] sm:$0xff]  ;;  %v383_v26 = vld [vmem:[#allocation2 + $0x888] sm:$0xff] }
  0xce   :  { %v385_v28 = vld [vmem:[#allocation2 + $0x898] sm:$0xff] }
  0xcf   :  { %2115 = vmatpush1.bf16.msra.mxu0 %v2114_v37  ;;  %v346_v37 = vld [vmem:[#allocation2 + $0x760] sm:$0xff]  ;;  %v417_v13 = vld [vmem:[#allocation2 + $0x998] sm:$0xff] }
  0xd0   :  { %2339 = vmatpush1.bf16.msra.mxu1 %v2338_v38  ;;  %2117 = vmatprep.subr.bf16.mxu0 %v2116_v39  ;;  %v344_v38 = vld [vmem:[#allocation2 + $0x750] sm:$0xff]  ;;  %v2360_v39 = vpack.c.bf16 %v349_v32, %v345_v31  ;;  %v2138_v45 = vpack.c.bf16 %v346_v37, %v342_v36  ;;  %v2380_v37 = vpack.c.bf16 %v389_v29, %v385_v28  ;;  %v421_v14 = vld [vmem:[#allocation2 + $0x9b8] sm:$0xff] }
  0xd1   :  { %2341 = vmatprep.subr.bf16.mxu1 %v2340_v43  ;;  %v353_v43 = vld [vmem:[#allocation2 + $0x798] sm:$0xff]  ;;  %v2362_v46 = vpack.c.bf16 %v348_v40, %v344_v38  ;;  %v384_v36 = vld [vmem:[#allocation2 + $0x890] sm:$0xff]  ;;  %v395_v40 = vld [vmem:[#allocation2 + $0x8e8] sm:$0xff] }
  0xd2   :  { %v388_v38 = vld [vmem:[#allocation2 + $0x8b0] sm:$0xff] }
  0xd3   :  { %2119 = vmatpush1.bf16.msra.mxu0 %v2118_v49  ;;  %v354_v49 = vld [vmem:[#allocation2 + $0x7a0] sm:$0xff] }
  0xd4   :  { %2343 = vmatpush1.bf16.msra.mxu1 %v2342_v50  ;;  %2121 = vmatprep.subr.bf16.mxu0 %v2120_v51  ;;  %v352_v50 = vld [vmem:[#allocation2 + $0x790] sm:$0xff]  ;;  %v2364_v51 = vpack.c.bf16 %v357_v44, %v353_v43  ;;  %v2142_v57 = vpack.c.bf16 %v354_v49, %v350_v48  ;;  %v2382_v44 = vpack.c.bf16 %v388_v38, %v384_v36  ;;  %v435_v36 = vld [vmem:[#allocation2 + $0xa28] sm:$0xff]  ;;  %v437_v38 = vld [vmem:[#allocation2 + $0xa38] sm:$0xff] }
  0xd5   :  { %2345 = vmatprep.subr.bf16.mxu1 %v2344_v55  ;;  %v361_v55 = vld [vmem:[#allocation2 + $0x7d8] sm:$0xff]  ;;  %v2366_v58 = vpack.c.bf16 %v356_v52, %v352_v50  ;;  %v392_v48 = vld [vmem:[#allocation2 + $0x8d0] sm:$0xff]  ;;  %v2384_v49 = vpack.c.bf16 %v397_v42, %v393_v41  ;;  %v403_v52 = vld [vmem:[#allocation2 + $0x928] sm:$0xff] }
  0xd6   :  { %v396_v50 = vld [vmem:[#allocation2 + $0x8f0] sm:$0xff]  ;;  %v430_v42 = vld [vmem:[#allocation2 + $0xa00] sm:$0xff] }
  0xd7   :  { %2123 = vmatpush1.bf16.msra.mxu0 %v2122_v61  ;;  %v362_v61 = vld [vmem:[#allocation2 + $0x7e0] sm:$0xff] }
  0xd8   :  { %2347 = vmatpush1.bf16.msra.mxu1 %v2346_v62  ;;  %2125 = vmatprep.subr.bf16.mxu0 %v2124_v63  ;;  %v360_v62 = vld [vmem:[#allocation2 + $0x7d0] sm:$0xff]  ;;  %v2368_v63 = vpack.c.bf16 %v365_v56, %v361_v55  ;;  %v2146_v5 = vpack.c.bf16 %v362_v61, %v358_v60  ;;  %v2386_v56 = vpack.c.bf16 %v396_v50, %v392_v48  ;;  %v443_v48 = vld [vmem:[#allocation2 + $0xa68] sm:$0xff]  ;;  %v445_v50 = vld [vmem:[#allocation2 + $0xa78] sm:$0xff] }
  0xd9   :  { %2349 = vmatprep.subr.bf16.mxu1 %v2348_v3  ;;  %v369_v3 = vld [vmem:[#allocation2 + $0x818] sm:$0xff]  ;;  %v2370_v6 = vpack.c.bf16 %v364_v0, %v360_v62  ;;  %v400_v60 = vld [vmem:[#allocation2 + $0x910] sm:$0xff]  ;;  %v2388_v61 = vpack.c.bf16 %v405_v54, %v401_v53  ;;  %v411_v0 = vld [vmem:[#allocation2 + $0x968] sm:$0xff] }
  0xda   :  { %v404_v62 = vld [vmem:[#allocation2 + $0x930] sm:$0xff]  ;;  %v438_v54 = vld [vmem:[#allocation2 + $0xa40] sm:$0xff] }
  0xdb   :  { %2127 = vmatpush1.bf16.msra.mxu0 %v2126_v9  ;;  %v370_v9 = vld [vmem:[#allocation2 + $0x820] sm:$0xff] }
  0xdc   :  { %2351 = vmatpush1.bf16.msra.mxu1 %v2350_v10  ;;  %2129 = vmatprep.subr.bf16.mxu0 %v2128_v11  ;;  %v368_v10 = vld [vmem:[#allocation2 + $0x810] sm:$0xff]  ;;  %v2372_v11 = vpack.c.bf16 %v373_v4, %v369_v3  ;;  %v2150_v18 = vpack.c.bf16 %v370_v9, %v366_v8  ;;  %v2390_v4 = vpack.c.bf16 %v404_v62, %v400_v60  ;;  %v451_v60 = vld [vmem:[#allocation2 + $0xaa8] sm:$0xff]  ;;  %v453_v62 = vld [vmem:[#allocation2 + $0xab8] sm:$0xff] }
  0xdd   :  { %2353 = vmatprep.subr.bf16.mxu1 %v2352_v15  ;;  %v377_v15 = vld [vmem:[#allocation2 + $0x858] sm:$0xff]  ;;  %v2374_v19 = vpack.c.bf16 %v372_v12, %v368_v10  ;;  %v408_v8 = vld [vmem:[#allocation2 + $0x950] sm:$0xff]  ;;  %v2392_v9 = vpack.c.bf16 %v413_v2, %v409_v1  ;;  %v419_v12 = vld [vmem:[#allocation2 + $0x9a8] sm:$0xff] }
  0xde   :  { %v2376_v24 = vpack.c.bf16 %v381_v16, %v377_v15  ;;  %v412_v10 = vld [vmem:[#allocation2 + $0x970] sm:$0xff]  ;;  %v446_v2 = vld [vmem:[#allocation2 + $0xa80] sm:$0xff] }
  0xdf   :  { %2131 = vmatpush1.bf16.msra.mxu0 %v2130_v21  ;;  %v374_v21 = vld [vmem:[#allocation2 + $0x840] sm:$0xff]  ;;  %v2394_v16 = vpack.c.bf16 %v412_v10, %v408_v8  ;;  %v459_v8 = vld [vmem:[#allocation2 + $0xae8] sm:$0xff]  ;;  %v461_v10 = vld [vmem:[#allocation2 + $0xaf8] sm:$0xff] }
  0xe0   :  { %2355 = vmatpush1.bf16.msra.mxu1 %v2354_v22  ;;  %2133 = vmatprep.subr.bf16.mxu0 %v2132_v23  ;;  %v378_v22 = vld [vmem:[#allocation2 + $0x860] sm:$0xff]  ;;  %v376_v23 = vld [vmem:[#allocation2 + $0x850] sm:$0xff] }
  0xe1   :  { %2357 = vmatprep.subr.bf16.mxu1 %v2356_v27  ;;  %v387_v27 = vld [vmem:[#allocation2 + $0x8a8] sm:$0xff]  ;;  %v2154_v31 = vpack.c.bf16 %v378_v22, %v374_v21  ;;  %v2378_v32 = vpack.c.bf16 %v380_v25, %v376_v23  ;;  %v2396_v21 = vpack.c.bf16 %v421_v14, %v417_v13  ;;  %v420_v22 = vld [vmem:[#allocation2 + $0x9b0] sm:$0xff]  ;;  %v425_v25 = vld [vmem:[#allocation2 + $0x9d8] sm:$0xff] }
  0xe2   :  { %v423_v23 = vld [vmem:[#allocation2 + $0x9c8] sm:$0xff]  ;;  %v454_v14 = vld [vmem:[#allocation2 + $0xac0] sm:$0xff] }
  0xe3   :  { %2135 = vmatpush1.bf16.msra.mxu0 %v2134_v33  ;;  %v2156_v33 = vpack.c.bf16 %v387_v27, %v383_v26  ;;  %v429_v26 = vld [vmem:[#allocation2 + $0x9f8] sm:$0xff] }
  0xe4   :  { %2359 = vmatpush1.bf16.msra.mxu1 %v2358_v34  ;;  %2137 = vmatprep.subr.bf16.mxu0 %v2136_v35  ;;  %v382_v34 = vld [vmem:[#allocation2 + $0x880] sm:$0xff] }
  0xe5   :  { %2361 = vmatprep.subr.bf16.mxu1 %v2360_v39  ;;  %v386_v35 = vld [vmem:[#allocation2 + $0x8a0] sm:$0xff]  ;;  %v391_v39 = vld [vmem:[#allocation2 + $0x8c8] sm:$0xff] }
  0xe6   :  { %v2158_v43 = vpack.c.bf16 %v386_v35, %v382_v34  ;;  %v428_v34 = vld [vmem:[#allocation2 + $0x9f0] sm:$0xff]  ;;  %v431_v35 = vld [vmem:[#allocation2 + $0xa08] sm:$0xff] }
  0xe7   :  { %2139 = vmatpush1.bf16.msra.mxu0 %v2138_v45  ;;  %v2160_v45 = vpack.c.bf16 %v395_v40, %v391_v39  ;;  %v2180_v41 = vpack.c.bf16 %v435_v36, %v431_v35 }
  0xe8   :  { %2363 = vmatpush1.bf16.msra.mxu1 %v2362_v46  ;;  %2141 = vmatprep.subr.bf16.mxu0 %v2140_v47  ;;  %v390_v46 = vld [vmem:[#allocation2 + $0x8c0] sm:$0xff] }
  0xe9   :  { %2365 = vmatprep.subr.bf16.mxu1 %v2364_v51  ;;  %v394_v47 = vld [vmem:[#allocation2 + $0x8e0] sm:$0xff]  ;;  %v399_v51 = vld [vmem:[#allocation2 + $0x908] sm:$0xff] }
  0xea   :  { %v2162_v55 = vpack.c.bf16 %v394_v47, %v390_v46  ;;  %v436_v46 = vld [vmem:[#allocation2 + $0xa30] sm:$0xff]  ;;  %v439_v47 = vld [vmem:[#allocation2 + $0xa48] sm:$0xff] }
  0xeb   :  { %2143 = vmatpush1.bf16.msra.mxu0 %v2142_v57  ;;  %v2164_v57 = vpack.c.bf16 %v403_v52, %v399_v51  ;;  %v2184_v53 = vpack.c.bf16 %v443_v48, %v439_v47 }
  0xec   :  { %2367 = vmatpush1.bf16.msra.mxu1 %v2366_v58  ;;  %2145 = vmatprep.subr.bf16.mxu0 %v2144_v59  ;;  %v398_v58 = vld [vmem:[#allocation2 + $0x900] sm:$0xff] }
  0xed   :  { %2369 = vmatprep.subr.bf16.mxu1 %v2368_v63  ;;  %v402_v59 = vld [vmem:[#allocation2 + $0x920] sm:$0xff]  ;;  %v407_v63 = vld [vmem:[#allocation2 + $0x948] sm:$0xff] }
  0xee   :  { %v2166_v3 = vpack.c.bf16 %v402_v59, %v398_v58  ;;  %v444_v58 = vld [vmem:[#allocation2 + $0xa70] sm:$0xff]  ;;  %v447_v59 = vld [vmem:[#allocation2 + $0xa88] sm:$0xff] }
  0xef   :  { %2147 = vmatpush1.bf16.msra.mxu0 %v2146_v5  ;;  %v2168_v5 = vpack.c.bf16 %v411_v0, %v407_v63  ;;  %v2188_v1 = vpack.c.bf16 %v451_v60, %v447_v59 }
  0xf0   :  { %2371 = vmatpush1.bf16.msra.mxu1 %v2370_v6  ;;  %2149 = vmatprep.subr.bf16.mxu0 %v2148_v7  ;;  %v406_v6 = vld [vmem:[#allocation2 + $0x940] sm:$0xff] }
  0xf1   :  { %2373 = vmatprep.subr.bf16.mxu1 %v2372_v11  ;;  %v410_v7 = vld [vmem:[#allocation2 + $0x960] sm:$0xff]  ;;  %v415_v11 = vld [vmem:[#allocation2 + $0x988] sm:$0xff] }
  0xf2   :  { %716 = vmatmul.mubr.f32.vlgmr.msra.gmra.mrb[0].mxu0 %v105_v17  ;;  %v2170_v15 = vpack.c.bf16 %v410_v7, %v406_v6  ;;  %v452_v6 = vld [vmem:[#allocation2 + $0xab0] sm:$0xff]  ;;  %v455_v7 = vld [vmem:[#allocation2 + $0xac8] sm:$0xff] }
  0xf3   :  { %2151 = vmatpush1.bf16.msra.mxu0 %v2150_v18  ;;  %1000 = vmatmul.mubr.f32.vlgmr.msra.gmra.mrb[0].mxu1 %v105_v17  ;;  %v2172_v17 = vpack.c.bf16 %v419_v12, %v415_v11  ;;  %v414_v18 = vld [vmem:[#allocation2 + $0x980] sm:$0xff]  ;;  %v2192_v13 = vpack.c.bf16 %v459_v8, %v455_v7 }
  0xf4   :  { %2375 = vmatpush1.bf16.msra.mxu1 %v2374_v19  ;;  %2153 = vmatprep.subr.bf16.mxu0 %v2152_v20  ;;  %v418_v19 = vld [vmem:[#allocation2 + $0x9a0] sm:$0xff]  ;;  %v416_v20 = vld [vmem:[#allocation2 + $0x990] sm:$0xff] }
  0xf5   :  { %2377 = vmatprep.subr.bf16.mxu1 %v2376_v24  ;;  %786 = vmatprep.mubr.f32.mxu0 %v108_v30  ;;  %v427_v24 = vld [vmem:[#allocation2 + $0x9e8] sm:$0xff]  ;;  %v2174_v27 = vpack.c.bf16 %v418_v19, %v414_v18  ;;  %v2398_v28 = vpack.c.bf16 %v420_v22, %v416_v20  ;;  %v460_v18 = vld [vmem:[#allocation2 + $0xaf0] sm:$0xff]  ;;  %v469_v22 = vld [vmem:[#allocation2 + $0xb38] sm:$0xff] }
  0xf6   :  { %1070 = vmatprep.mubr.f32.mxu1 %v108_v30  ;;  %v2176_v29 = vpack.c.bf16 %v427_v24, %v423_v23  ;;  %v422_v30 = vld [vmem:[#allocation2 + $0x9c0] sm:$0xff]  ;;  %v463_v19 = vld [vmem:[#allocation2 + $0xb08] sm:$0xff] }
  0xf7   :  { %2155 = vmatpush1.bf16.msra.mxu0 %v2154_v31  ;;  %v426_v31 = vld [vmem:[#allocation2 + $0x9e0] sm:$0xff]  ;;  %v467_v20 = vld [vmem:[#allocation2 + $0xb28] sm:$0xff] }
  0xf8   :  { %2379 = vmatpush1.bf16.msra.mxu1 %v2378_v32  ;;  %2157 = vmatprep.subr.bf16.mxu0 %v2156_v33  ;;  %v424_v32 = vld [vmem:[#allocation2 + $0x9d0] sm:$0xff]  ;;  %v2400_v33 = vpack.c.bf16 %v429_v26, %v425_v25  ;;  %v2178_v39 = vpack.c.bf16 %v426_v31, %v422_v30  ;;  %v2196_v25 = vpack.c.bf16 %v467_v20, %v463_v19  ;;  %v462_v26 = vld [vmem:[#allocation2 + $0xb00] sm:$0xff]  ;;  %v471_v31 = vld [vmem:[#allocation2 + $0xb48] sm:$0xff] }
  0xf9   :  { %2381 = vmatprep.subr.bf16.mxu1 %v2380_v37  ;;  %v433_v37 = vld [vmem:[#allocation2 + $0xa18] sm:$0xff]  ;;  %v2402_v40 = vpack.c.bf16 %v428_v34, %v424_v32  ;;  %v468_v30 = vld [vmem:[#allocation2 + $0xb30] sm:$0xff]  ;;  %v475_v32 = vld [vmem:[#allocation2 + $0xb68] sm:$0xff] }
  0xfa   :  { %v477_v34 = vld [vmem:[#allocation2 + $0xb78] sm:$0xff]  ;;  %v107_v19 = vld [vmem:[%s3176_s0 + $0x20] sm:$0xff] }
  0xfb   :  { %2159 = vmatpush1.bf16.msra.mxu0 %v2158_v43  ;;  %v434_v43 = vld [vmem:[#allocation2 + $0xa20] sm:$0xff] }
  0xfc   :  { %2383 = vmatpush1.bf16.msra.mxu1 %v2382_v44  ;;  %2161 = vmatprep.subr.bf16.mxu0 %v2160_v45  ;;  %v432_v44 = vld [vmem:[#allocation2 + $0xa10] sm:$0xff]  ;;  %v2404_v45 = vpack.c.bf16 %v437_v38, %v433_v37  ;;  %v2182_v51 = vpack.c.bf16 %v434_v43, %v430_v42  ;;  %v2200_v37 = vpack.c.bf16 %v475_v32, %v471_v31  ;;  %v470_v38 = vld [vmem:[#allocation2 + $0xb40] sm:$0xff]  ;;  %v479_v43 = vld [vmem:[#allocation2 + $0xb88] sm:$0xff] }
  0xfd   :  { %2385 = vmatprep.subr.bf16.mxu1 %v2384_v49  ;;  %v441_v49 = vld [vmem:[#allocation2 + $0xa58] sm:$0xff]  ;;  %v2406_v52 = vpack.c.bf16 %v436_v46, %v432_v44  ;;  %v476_v42 = vld [vmem:[#allocation2 + $0xb70] sm:$0xff]  ;;  %v483_v44 = vld [vmem:[#allocation2 + $0xba8] sm:$0xff] }
  0xfe   :  { %v485_v46 = vld [vmem:[#allocation2 + $0xbb8] sm:$0xff] }
  0xff   :  { %2163 = vmatpush1.bf16.msra.mxu0 %v2162_v55  ;;  %v442_v55 = vld [vmem:[#allocation2 + $0xa60] sm:$0xff]  ;;  %v517_v31 = vld [vmem:[#allocation2 + $0xcb8] sm:$0xff] }
 0x100   :  { %2387 = vmatpush1.bf16.msra.mxu1 %v2386_v56  ;;  %2165 = vmatprep.subr.bf16.mxu0 %v2164_v57  ;;  %v440_v56 = vld [vmem:[#allocation2 + $0xa50] sm:$0xff]  ;;  %v2408_v57 = vpack.c.bf16 %v445_v50, %v441_v49  ;;  %v2186_v63 = vpack.c.bf16 %v442_v55, %v438_v54  ;;  %v2204_v49 = vpack.c.bf16 %v483_v44, %v479_v43  ;;  %v478_v50 = vld [vmem:[#allocation2 + $0xb80] sm:$0xff]  ;;  %v487_v55 = vld [vmem:[#allocation2 + $0xbc8] sm:$0xff] }
 0x101   :  { %2389 = vmatprep.subr.bf16.mxu1 %v2388_v61  ;;  %v449_v61 = vld [vmem:[#allocation2 + $0xa98] sm:$0xff]  ;;  %v2410_v0 = vpack.c.bf16 %v444_v58, %v440_v56  ;;  %v484_v54 = vld [vmem:[#allocation2 + $0xbb0] sm:$0xff]  ;;  %v491_v56 = vld [vmem:[#allocation2 + $0xbe8] sm:$0xff] }
 0x102   :  { %v493_v58 = vld [vmem:[#allocation2 + $0xbf8] sm:$0xff] }
 0x103   :  { %2167 = vmatpush1.bf16.msra.mxu0 %v2166_v3  ;;  %v450_v3 = vld [vmem:[#allocation2 + $0xaa0] sm:$0xff]  ;;  %v521_v43 = vld [vmem:[#allocation2 + $0xcd8] sm:$0xff] }
 0x104   :  { %2391 = vmatpush1.bf16.msra.mxu1 %v2390_v4  ;;  %2169 = vmatprep.subr.bf16.mxu0 %v2168_v5  ;;  %v448_v4 = vld [vmem:[#allocation2 + $0xa90] sm:$0xff]  ;;  %v2412_v5 = vpack.c.bf16 %v453_v62, %v449_v61  ;;  %v2190_v11 = vpack.c.bf16 %v450_v3, %v446_v2  ;;  %v2208_v61 = vpack.c.bf16 %v491_v56, %v487_v55  ;;  %v486_v62 = vld [vmem:[#allocation2 + $0xbc0] sm:$0xff]  ;;  %v495_v3 = vld [vmem:[#allocation2 + $0xc08] sm:$0xff] }
 0x105   :  { %2393 = vmatprep.subr.bf16.mxu1 %v2392_v9  ;;  %v457_v9 = vld [vmem:[#allocation2 + $0xad8] sm:$0xff]  ;;  %v2414_v12 = vpack.c.bf16 %v452_v6, %v448_v4  ;;  %v492_v2 = vld [vmem:[#allocation2 + $0xbf0] sm:$0xff]  ;;  %v499_v4 = vld [vmem:[#allocation2 + $0xc28] sm:$0xff] }
 0x106   :  { %v501_v6 = vld [vmem:[#allocation2 + $0xc38] sm:$0xff] }
 0x107   :  { %2171 = vmatpush1.bf16.msra.mxu0 %v2170_v15  ;;  %v458_v15 = vld [vmem:[#allocation2 + $0xae0] sm:$0xff]  ;;  %v525_v44 = vld [vmem:[#allocation2 + $0xcf8] sm:$0xff] }
 0x108   :  { %2395 = vmatpush1.bf16.msra.mxu1 %v2394_v16  ;;  %2173 = vmatprep.subr.bf16.mxu0 %v2172_v17  ;;  %v456_v16 = vld [vmem:[#allocation2 + $0xad0] sm:$0xff]  ;;  %v2416_v17 = vpack.c.bf16 %v461_v10, %v457_v9  ;;  %v2194_v23 = vpack.c.bf16 %v458_v15, %v454_v14  ;;  %v2212_v9 = vpack.c.bf16 %v499_v4, %v495_v3  ;;  %v494_v10 = vld [vmem:[#allocation2 + $0xc00] sm:$0xff]  ;;  %v503_v15 = vld [vmem:[#allocation2 + $0xc48] sm:$0xff] }
 0x109   :  { %2397 = vmatprep.subr.bf16.mxu1 %v2396_v21  ;;  %v465_v21 = vld [vmem:[#allocation2 + $0xb18] sm:$0xff]  ;;  %v2418_v24 = vpack.c.bf16 %v460_v18, %v456_v16  ;;  %v500_v14 = vld [vmem:[#allocation2 + $0xc30] sm:$0xff]  ;;  %v507_v16 = vld [vmem:[#allocation2 + $0xc68] sm:$0xff] }
 0x10a   :  { %v509_v18 = vld [vmem:[#allocation2 + $0xc78] sm:$0xff] }
 0x10b   :  { %2175 = vmatpush1.bf16.msra.mxu0 %v2174_v27  ;;  %v466_v27 = vld [vmem:[#allocation2 + $0xb20] sm:$0xff]  ;;  %v529_v55 = vld [vmem:[#allocation2 + $0xd18] sm:$0xff] }
 0x10c   :  { %2399 = vmatpush1.bf16.msra.mxu1 %v2398_v28  ;;  %2177 = vmatprep.subr.bf16.mxu0 %v2176_v29  ;;  %v464_v28 = vld [vmem:[#allocation2 + $0xb10] sm:$0xff]  ;;  %v2420_v29 = vpack.c.bf16 %v469_v22, %v465_v21  ;;  %v2198_v35 = vpack.c.bf16 %v466_v27, %v462_v26  ;;  %v2216_v22 = vpack.c.bf16 %v507_v16, %v503_v15  ;;  %v533_v56 = vld [vmem:[#allocation2 + $0xd38] sm:$0xff] }
 0x10d   :  { %2401 = vmatprep.subr.bf16.mxu1 %v2400_v33  ;;  %v473_v33 = vld [vmem:[#allocation2 + $0xb58] sm:$0xff]  ;;  %v2422_v36 = vpack.c.bf16 %v468_v30, %v464_v28  ;;  %v508_v27 = vld [vmem:[#allocation2 + $0xc70] sm:$0xff]  ;;  %v511_v28 = vld [vmem:[#allocation2 + $0xc88] sm:$0xff] }
 0x10e   :  { %v513_v30 = vld [vmem:[#allocation2 + $0xc98] sm:$0xff] }
 0x10f   :  { %2179 = vmatpush1.bf16.msra.mxu0 %v2178_v39  ;;  %v474_v39 = vld [vmem:[#allocation2 + $0xb60] sm:$0xff]  ;;  %v537_v3 = vld [vmem:[#allocation2 + $0xd58] sm:$0xff] }
 0x110   :  { %2403 = vmatpush1.bf16.msra.mxu1 %v2402_v40  ;;  %2181 = vmatprep.subr.bf16.mxu0 %v2180_v41  ;;  %v472_v40 = vld [vmem:[#allocation2 + $0xb50] sm:$0xff]  ;;  %v2424_v41 = vpack.c.bf16 %v477_v34, %v473_v33  ;;  %v2202_v47 = vpack.c.bf16 %v474_v39, %v470_v38  ;;  %v2444_v38 = vpack.c.bf16 %v517_v31, %v513_v30  ;;  %v541_v4 = vld [vmem:[#allocation2 + $0xd78] sm:$0xff] }
 0x111   :  { %2405 = vmatprep.subr.bf16.mxu1 %v2404_v45  ;;  %v481_v45 = vld [vmem:[#allocation2 + $0xb98] sm:$0xff]  ;;  %v2426_v48 = vpack.c.bf16 %v476_v42, %v472_v40  ;;  %v516_v39 = vld [vmem:[#allocation2 + $0xcb0] sm:$0xff]  ;;  %v519_v40 = vld [vmem:[#allocation2 + $0xcc8] sm:$0xff]  ;;  %v2998_v42 = vmov 0.0  }
 0x112   :  { %v545_v15 = vld [vmem:[#allocation2 + $0xd98] sm:$0xff] }
 0x113   :  { %2183 = vmatpush1.bf16.msra.mxu0 %v2182_v51  ;;  %v482_v51 = vld [vmem:[#allocation2 + $0xba0] sm:$0xff]  ;;  %v549_v16 = vld [vmem:[#allocation2 + $0xdb8] sm:$0xff] }
 0x114   :  { %2407 = vmatpush1.bf16.msra.mxu1 %v2406_v52  ;;  %2185 = vmatprep.subr.bf16.mxu0 %v2184_v53  ;;  %v480_v52 = vld [vmem:[#allocation2 + $0xb90] sm:$0xff]  ;;  %v2428_v53 = vpack.c.bf16 %v485_v46, %v481_v45  ;;  %v2206_v59 = vpack.c.bf16 %v482_v51, %v478_v50  ;;  %v2448_v51 = vpack.c.bf16 %v525_v44, %v521_v43  ;;  %v1152_v44 = vld [vmem:[#allocation7] sm:$0xff] }
 0x115   :  { %2409 = vmatprep.subr.bf16.mxu1 %v2408_v57  ;;  %v489_v57 = vld [vmem:[#allocation2 + $0xbd8] sm:$0xff]  ;;  %v2430_v60 = vpack.c.bf16 %v484_v54, %v480_v52  ;;  %v520_v50 = vld [vmem:[#allocation2 + $0xcd0] sm:$0xff]  ;;  %v531_v54 = vld [vmem:[#allocation2 + $0xd28] sm:$0xff] }
 0x116   :  { %v524_v52 = vld [vmem:[#allocation2 + $0xcf0] sm:$0xff] }
 0x117   :  { %2187 = vmatpush1.bf16.msra.mxu0 %v2186_v63  ;;  %v490_v63 = vld [vmem:[#allocation2 + $0xbe0] sm:$0xff] }
 0x118   :  { %2411 = vmatpush1.bf16.msra.mxu1 %v2410_v0  ;;  %2189 = vmatprep.subr.bf16.mxu0 %v2188_v1  ;;  %v488_v0 = vld [vmem:[#allocation2 + $0xbd0] sm:$0xff]  ;;  %v2432_v1 = vpack.c.bf16 %v493_v58, %v489_v57  ;;  %v2210_v7 = vpack.c.bf16 %v490_v63, %v486_v62  ;;  %v2450_v58 = vpack.c.bf16 %v524_v52, %v520_v50  ;;  %v1167_v52 = vld [vmem:[#allocation7 + $0x78] sm:$0xff] }
 0x119   :  { %2413 = vmatprep.subr.bf16.mxu1 %v2412_v5  ;;  %v497_v5 = vld [vmem:[#allocation2 + $0xc18] sm:$0xff]  ;;  %v2434_v8 = vpack.c.bf16 %v492_v2, %v488_v0  ;;  %v528_v62 = vld [vmem:[#allocation2 + $0xd10] sm:$0xff]  ;;  %v2452_v63 = vpack.c.bf16 %v533_v56, %v529_v55  ;;  %v539_v2 = vld [vmem:[#allocation2 + $0xd68] sm:$0xff] }
 0x11a   :  { %v532_v0 = vld [vmem:[#allocation2 + $0xd30] sm:$0xff] }
 0x11b   :  { %2191 = vmatpush1.bf16.msra.mxu0 %v2190_v11  ;;  %v498_v11 = vld [vmem:[#allocation2 + $0xc20] sm:$0xff]  ;;  %v1165_v50 = vld [vmem:[#allocation7 + $0x68] sm:$0xff] }
 0x11c   :  { %2415 = vmatpush1.bf16.msra.mxu1 %v2414_v12  ;;  %2193 = vmatprep.subr.bf16.mxu0 %v2192_v13  ;;  %v496_v12 = vld [vmem:[#allocation2 + $0xc10] sm:$0xff]  ;;  %v2436_v13 = vpack.c.bf16 %v501_v6, %v497_v5  ;;  %v2214_v20 = vpack.c.bf16 %v498_v11, %v494_v10  ;;  %v2454_v6 = vpack.c.bf16 %v532_v0, %v528_v62  ;;  %v1171_v0 = vld [vmem:[#allocation7 + $0x98] sm:$0xff] }
 0x11d   :  { %2417 = vmatprep.subr.bf16.mxu1 %v2416_v17  ;;  %v505_v17 = vld [vmem:[#allocation2 + $0xc58] sm:$0xff]  ;;  %v2438_v21 = vpack.c.bf16 %v500_v14, %v496_v12  ;;  %v536_v10 = vld [vmem:[#allocation2 + $0xd50] sm:$0xff]  ;;  %v2456_v11 = vpack.c.bf16 %v541_v4, %v537_v3  ;;  %v547_v14 = vld [vmem:[#allocation2 + $0xda8] sm:$0xff] }
 0x11e   :  { %v2440_v26 = vpack.c.bf16 %v509_v18, %v505_v17  ;;  %v540_v12 = vld [vmem:[#allocation2 + $0xd70] sm:$0xff] }
 0x11f   :  { %2195 = vmatpush1.bf16.msra.mxu0 %v2194_v23  ;;  %v502_v23 = vld [vmem:[#allocation2 + $0xc40] sm:$0xff]  ;;  %v2458_v18 = vpack.c.bf16 %v540_v12, %v536_v10  ;;  %v1169_v62 = vld [vmem:[#allocation7 + $0x88] sm:$0xff] }
 0x120   :  { %2419 = vmatpush1.bf16.msra.mxu1 %v2418_v24  ;;  %2197 = vmatprep.subr.bf16.mxu0 %v2196_v25  ;;  %v506_v24 = vld [vmem:[#allocation2 + $0xc60] sm:$0xff]  ;;  %v504_v25 = vld [vmem:[#allocation2 + $0xc50] sm:$0xff] }
 0x121   :  { %2421 = vmatprep.subr.bf16.mxu1 %v2420_v29  ;;  %v515_v29 = vld [vmem:[#allocation2 + $0xca8] sm:$0xff]  ;;  %v2218_v32 = vpack.c.bf16 %v506_v24, %v502_v23  ;;  %v2442_v33 = vpack.c.bf16 %v508_v27, %v504_v25  ;;  %v2460_v23 = vpack.c.bf16 %v549_v16, %v545_v15  ;;  %v548_v24 = vld [vmem:[#allocation2 + $0xdb0] sm:$0xff]  ;;  %v553_v27 = vld [vmem:[#allocation2 + $0xdd8] sm:$0xff] }
 0x122   :  { %v2220_v34 = vpack.c.bf16 %v515_v29, %v511_v28  ;;  %v551_v25 = vld [vmem:[#allocation2 + $0xdc8] sm:$0xff]  ;;  %v557_v28 = vld [vmem:[#allocation2 + $0xdf8] sm:$0xff] }
 0x123   :  { %2199 = vmatpush1.bf16.msra.mxu0 %v2198_v35  ;;  %v510_v35 = vld [vmem:[#allocation2 + $0xc80] sm:$0xff]  ;;  %v1177_v10 = vld [vmem:[#allocation7 + $0xc8] sm:$0xff] }
 0x124   :  { %2423 = vmatpush1.bf16.msra.mxu1 %v2422_v36  ;;  %2201 = vmatprep.subr.bf16.mxu0 %v2200_v37  ;;  %v514_v36 = vld [vmem:[#allocation2 + $0xca0] sm:$0xff]  ;;  %v512_v37 = vld [vmem:[#allocation2 + $0xc90] sm:$0xff] }
 0x125   :  { %2425 = vmatprep.subr.bf16.mxu1 %v2424_v41  ;;  %v523_v41 = vld [vmem:[#allocation2 + $0xce8] sm:$0xff]  ;;  %v2222_v45 = vpack.c.bf16 %v514_v36, %v510_v35  ;;  %v2446_v46 = vpack.c.bf16 %v516_v39, %v512_v37  ;;  %v2464_v35 = vpack.c.bf16 %v557_v28, %v553_v27  ;;  %v556_v36 = vld [vmem:[#allocation2 + $0xdf0] sm:$0xff]  ;;  %v1155_v39 = vld [vmem:[#allocation7 + $0x18] sm:$0xff] }
 0x126   :  { %v1153_v37 = vld [vmem:[#allocation7 + $0x8] sm:$0xff]  ;;  %v1179_v12 = vld [vmem:[#allocation7 + $0xd8] sm:$0xff] }
 0x127   :  { %2203 = vmatpush1.bf16.msra.mxu0 %v2202_v47  ;;  %v2224_v47 = vpack.c.bf16 %v523_v41, %v519_v40  ;;  %v1159_v40 = vld [vmem:[#allocation7 + $0x38] sm:$0xff] }
 0x128   :  { %2427 = vmatpush1.bf16.msra.mxu1 %v2426_v48  ;;  %2205 = vmatprep.subr.bf16.mxu0 %v2204_v49  ;;  %v518_v48 = vld [vmem:[#allocation2 + $0xcc0] sm:$0xff] }
 0x129   :  { %2429 = vmatprep.subr.bf16.mxu1 %v2428_v53  ;;  %v522_v49 = vld [vmem:[#allocation2 + $0xce0] sm:$0xff]  ;;  %v527_v53 = vld [vmem:[#allocation2 + $0xd08] sm:$0xff] }
 0x12a   :  { %v2226_v57 = vpack.c.bf16 %v522_v49, %v518_v48  ;;  %v1158_v48 = vld [vmem:[#allocation7 + $0x30] sm:$0xff]  ;;  %v1161_v49 = vld [vmem:[#allocation7 + $0x48] sm:$0xff] }
 0x12b   :  { %2207 = vmatpush1.bf16.msra.mxu0 %v2206_v59  ;;  %v2228_v59 = vpack.c.bf16 %v531_v54, %v527_v53  ;;  %v109_v53 = vld [vmem:[%s3176_s0 + $0x30] sm:$0xff]  ;;  %v2472_v56 = vpack.c.bf16 %v1165_v50, %v1161_v49  ;;  %v1207_v49 = vld [vmem:[#allocation7 + $0x1b8] sm:$0xff]  ;;  %s2999_s0 = smov [#allocation13]  }
 0x12c   :  { %2431 = vmatpush1.bf16.msra.mxu1 %v2430_v60  ;;  %2209 = vmatprep.subr.bf16.mxu0 %v2208_v61  ;;  %v526_v60 = vld [vmem:[#allocation2 + $0xd00] sm:$0xff]  ;;  %s1937_s27 = sshll.u32 %s2999_s0, 4  ;;  %s1938_s27 = int_to_ptr.vmem [resolvable:$true] %s1937_s27 }
 0x12d   :  { %2433 = vmatprep.subr.bf16.mxu1 %v2432_v1  ;;  %v530_v61 = vld [vmem:[#allocation2 + $0xd20] sm:$0xff]  ;;  %v535_v1 = vld [vmem:[#allocation2 + $0xd48] sm:$0xff]  ;;  %s2956_s12 = scalar_lea.vmem %s1938_s27, 128  ;;  %p2961_p7 = scmp.lt.s32.totalorder %s1938_s27, %s1938_s27 }
 0x12e   :  { %v2230_v5 = vpack.c.bf16 %v530_v61, %v526_v60  ;;  %v1166_v61 = vld [vmem:[#allocation7 + $0x70] sm:$0xff]  ;;  %p2957_p6 = scmp.ne.s32.totalorder %s1938_s27, %s2956_s12  ;;  %p2962_p8 = scmp.lt.s32.totalorder %s2956_s12, %s2956_s12 }
 0x12f   :  { %2211 = vmatpush1.bf16.msra.mxu0 %v2210_v7  ;;  %v2232_v7 = vpack.c.bf16 %v539_v2, %v535_v1  ;;  %v1175_v1 = vld [vmem:[#allocation7 + $0xb8] sm:$0xff] }
 0x130   :  { %2435 = vmatpush1.bf16.msra.mxu1 %v2434_v8  ;;  %2213 = vmatprep.subr.bf16.mxu0 %v2212_v9  ;;  %v534_v8 = vld [vmem:[#allocation2 + $0xd40] sm:$0xff]  ;;  %p2963_p9 = por %p2962_p8, %p2961_p7 }
 0x131   :  { %2437 = vmatprep.subr.bf16.mxu1 %v2436_v13  ;;  %v538_v9 = vld [vmem:[#allocation2 + $0xd60] sm:$0xff]  ;;  %v543_v13 = vld [vmem:[#allocation2 + $0xd88] sm:$0xff] }
 0x132   :  { %787 = vmatmul.mubr.f32.vlgmr.msra.gmra.mrb[0].mxu0 %v107_v19  ;;  %v2234_v17 = vpack.c.bf16 %v538_v9, %v534_v8  ;;  %v2604_v8 = vpack.c.bf16 %v1175_v1, %v1171_v0  ;;  %v1174_v9 = vld [vmem:[#allocation7 + $0xb0] sm:$0xff]  ;;  %v1208_v1 = vld [vmem:[#allocation7 + $0x1c0] sm:$0xff]  ;;  %p2964_p10 = pnand %p2963_p9, %p2957_p6 }
 0x133   :  { %2215 = vmatpush1.bf16.msra.mxu0 %v2214_v20  ;;  %1071 = vmatmul.mubr.f32.vlgmr.msra.gmra.mrb[0].mxu1 %v107_v19  ;;  %v2236_v19 = vpack.c.bf16 %v547_v14, %v543_v13  ;;  %v542_v20 = vld [vmem:[#allocation2 + $0xd80] sm:$0xff] }
 0x134   :  { %2439 = vmatpush1.bf16.msra.mxu1 %v2438_v21  ;;  %2217 = vmatprep.subr.bf16.mxu0 %v2216_v22  ;;  %v546_v21 = vld [vmem:[#allocation2 + $0xda0] sm:$0xff]  ;;  %v544_v22 = vld [vmem:[#allocation2 + $0xd90] sm:$0xff] }
 0x135   :  { %2441 = vmatprep.subr.bf16.mxu1 %v2440_v26  ;;  %857 = vmatprep.mubr.f32.mxu0 %v2998_v42  ;;  %v555_v26 = vld [vmem:[#allocation2 + $0xde8] sm:$0xff]  ;;  %v2238_v29 = vpack.c.bf16 %v546_v21, %v542_v20  ;;  %v2462_v30 = vpack.c.bf16 %v548_v24, %v544_v22  ;;  %v1183_v13 = vld [vmem:[#allocation7 + $0xf8] sm:$0xff]  ;;  %v1182_v21 = vld [vmem:[#allocation7 + $0xf0] sm:$0xff] }
 0x136   :  { %1141 = vmatprep.mubr.f32.mxu1 %v2998_v42  ;;  %v2240_v31 = vpack.c.bf16 %v555_v26, %v551_v25  ;;  %v2608_v20 = vpack.c.bf16 %v1183_v13, %v1179_v12  ;;  %v1185_v22 = vld [vmem:[#allocation7 + $0x108] sm:$0xff]  ;;  %v1187_v24 = vld [vmem:[#allocation7 + $0x118] sm:$0xff]  ;;  %v1216_v13 = vld [vmem:[#allocation7 + $0x200] sm:$0xff] }
 0x137   :  { %2219 = vmatpush1.bf16.msra.mxu0 %v2218_v32  ;;  %v550_v32 = vld [vmem:[#allocation2 + $0xdc0] sm:$0xff] }
 0x138   :  { %2443 = vmatpush1.bf16.msra.mxu1 %v2442_v33  ;;  %2221 = vmatprep.subr.bf16.mxu0 %v2220_v34  ;;  %v554_v33 = vld [vmem:[#allocation2 + $0xde0] sm:$0xff]  ;;  %v552_v34 = vld [vmem:[#allocation2 + $0xdd0] sm:$0xff] }
 0x139   :  { %2445 = vmatprep.subr.bf16.mxu1 %v2444_v38  ;;  %v1157_v38 = vld [vmem:[#allocation7 + $0x28] sm:$0xff]  ;;  %v2242_v41 = vpack.c.bf16 %v554_v33, %v550_v32  ;;  %v2466_v42 = vpack.c.bf16 %v556_v36, %v552_v34  ;;  %v1191_v25 = vld [vmem:[#allocation7 + $0x138] sm:$0xff]  ;;  %v1190_v33 = vld [vmem:[#allocation7 + $0x130] sm:$0xff] }
 0x13a   :  { %v2468_v43 = vpack.c.bf16 %v1157_v38, %v1153_v37  ;;  %v2612_v32 = vpack.c.bf16 %v1191_v25, %v1187_v24  ;;  %v1193_v34 = vld [vmem:[#allocation7 + $0x148] sm:$0xff]  ;;  %v1195_v36 = vld [vmem:[#allocation7 + $0x158] sm:$0xff]  ;;  %v1224_v25 = vld [vmem:[#allocation7 + $0x240] sm:$0xff] }
 0x13b   :  { %2223 = vmatpush1.bf16.msra.mxu0 %v2222_v45  ;;  %v1156_v45 = vld [vmem:[#allocation7 + $0x20] sm:$0xff]  ;;  %v1199_v37 = vld [vmem:[#allocation7 + $0x178] sm:$0xff] }
 0x13c   :  { %2447 = vmatpush1.bf16.msra.mxu1 %v2446_v46  ;;  %2225 = vmatprep.subr.bf16.mxu0 %v2224_v47  ;;  %v1154_v46 = vld [vmem:[#allocation7 + $0x10] sm:$0xff]  ;;  %v2596_v47 = vpack.c.bf16 %v1159_v40, %v1155_v39  ;;  %v2470_v54 = vpack.c.bf16 %v1156_v45, %v1152_v44  ;;  %v2616_v44 = vpack.c.bf16 %v1199_v37, %v1195_v36  ;;  %v1232_v37 = vld [vmem:[#allocation7 + $0x280] sm:$0xff] }
 0x13d   :  { %2449 = vmatprep.subr.bf16.mxu1 %v2448_v51  ;;  %v1163_v51 = vld [vmem:[#allocation7 + $0x58] sm:$0xff]  ;;  %v2598_v55 = vpack.c.bf16 %v1158_v48, %v1154_v46  ;;  %v1198_v45 = vld [vmem:[#allocation7 + $0x170] sm:$0xff]  ;;  %v1201_v46 = vld [vmem:[#allocation7 + $0x188] sm:$0xff] }
 0x13e   :  { %v2600_v60 = vpack.c.bf16 %v1167_v52, %v1163_v51  ;;  %v1203_v48 = vld [vmem:[#allocation7 + $0x198] sm:$0xff] }
 0x13f   :  { %2227 = vmatpush1.bf16.msra.mxu0 %v2226_v57  ;;  %v1160_v57 = vld [vmem:[#allocation7 + $0x40] sm:$0xff] }
 0x140   :  { %2451 = vmatpush1.bf16.msra.mxu1 %v2450_v58  ;;  %2229 = vmatprep.subr.bf16.mxu0 %v2228_v59  ;;  %v1164_v58 = vld [vmem:[#allocation7 + $0x60] sm:$0xff]  ;;  %v1162_v59 = vld [vmem:[#allocation7 + $0x50] sm:$0xff] }
 0x141   :  { %2453 = vmatprep.subr.bf16.mxu1 %v2452_v63  ;;  %v1173_v63 = vld [vmem:[#allocation7 + $0xa8] sm:$0xff]  ;;  %v2474_v2 = vpack.c.bf16 %v1164_v58, %v1160_v57  ;;  %v2602_v3 = vpack.c.bf16 %v1166_v61, %v1162_v59  ;;  %v1206_v57 = vld [vmem:[#allocation7 + $0x1b0] sm:$0xff]  ;;  %v1215_v61 = vld [vmem:[#allocation7 + $0x1f8] sm:$0xff] }
 0x142   :  { %v2476_v4 = vpack.c.bf16 %v1173_v63, %v1169_v62  ;;  %v1209_v58 = vld [vmem:[#allocation7 + $0x1c8] sm:$0xff] }
 0x143   :  { %2231 = vmatpush1.bf16.msra.mxu0 %v2230_v5  ;;  %v1168_v5 = vld [vmem:[#allocation7 + $0x80] sm:$0xff]  ;;  %v1213_v59 = vld [vmem:[#allocation7 + $0x1e8] sm:$0xff] }
 0x144   :  { %2455 = vmatpush1.bf16.msra.mxu1 %v2454_v6  ;;  %2233 = vmatprep.subr.bf16.mxu0 %v2232_v7  ;;  %v1172_v6 = vld [vmem:[#allocation7 + $0xa0] sm:$0xff]  ;;  %v1170_v7 = vld [vmem:[#allocation7 + $0x90] sm:$0xff]  ;;  %v2496_v0 = vpack.c.bf16 %v1213_v59, %v1209_v58 }
 0x145   :  { %2457 = vmatprep.subr.bf16.mxu1 %v2456_v11  ;;  %v1181_v11 = vld [vmem:[#allocation7 + $0xe8] sm:$0xff]  ;;  %v2478_v14 = vpack.c.bf16 %v1172_v6, %v1168_v5  ;;  %v2606_v15 = vpack.c.bf16 %v1174_v9, %v1170_v7  ;;  %v1214_v5 = vld [vmem:[#allocation7 + $0x1f0] sm:$0xff]  ;;  %v1223_v9 = vld [vmem:[#allocation7 + $0x238] sm:$0xff] }
 0x146   :  { %v2480_v16 = vpack.c.bf16 %v1181_v11, %v1177_v10  ;;  %v1217_v6 = vld [vmem:[#allocation7 + $0x208] sm:$0xff] }
 0x147   :  { %2235 = vmatpush1.bf16.msra.mxu0 %v2234_v17  ;;  %v1176_v17 = vld [vmem:[#allocation7 + $0xc0] sm:$0xff]  ;;  %v1221_v7 = vld [vmem:[#allocation7 + $0x228] sm:$0xff] }
 0x148   :  { %2459 = vmatpush1.bf16.msra.mxu1 %v2458_v18  ;;  %2237 = vmatprep.subr.bf16.mxu0 %v2236_v19  ;;  %v1180_v18 = vld [vmem:[#allocation7 + $0xe0] sm:$0xff]  ;;  %v1178_v19 = vld [vmem:[#allocation7 + $0xd0] sm:$0xff]  ;;  %v2500_v12 = vpack.c.bf16 %v1221_v7, %v1217_v6 }
 0x149   :  { %2461 = vmatprep.subr.bf16.mxu1 %v2460_v23  ;;  %v1189_v23 = vld [vmem:[#allocation7 + $0x128] sm:$0xff]  ;;  %v2482_v26 = vpack.c.bf16 %v1180_v18, %v1176_v17  ;;  %v2610_v27 = vpack.c.bf16 %v1182_v21, %v1178_v19  ;;  %v1222_v17 = vld [vmem:[#allocation7 + $0x230] sm:$0xff]  ;;  %v1231_v21 = vld [vmem:[#allocation7 + $0x278] sm:$0xff] }
 0x14a   :  { %v2484_v28 = vpack.c.bf16 %v1189_v23, %v1185_v22  ;;  %v1225_v18 = vld [vmem:[#allocation7 + $0x248] sm:$0xff] }
 0x14b   :  { %2239 = vmatpush1.bf16.msra.mxu0 %v2238_v29  ;;  %v1184_v29 = vld [vmem:[#allocation7 + $0x100] sm:$0xff]  ;;  %v1229_v19 = vld [vmem:[#allocation7 + $0x268] sm:$0xff] }
 0x14c   :  { %2463 = vmatpush1.bf16.msra.mxu1 %v2462_v30  ;;  %2241 = vmatprep.subr.bf16.mxu0 %v2240_v31  ;;  %v1188_v30 = vld [vmem:[#allocation7 + $0x120] sm:$0xff]  ;;  %v1186_v31 = vld [vmem:[#allocation7 + $0x110] sm:$0xff]  ;;  %v2504_v24 = vpack.c.bf16 %v1229_v19, %v1225_v18 }
 0x14d   :  { %2465 = vmatprep.subr.bf16.mxu1 %v2464_v35  ;;  %v1197_v35 = vld [vmem:[#allocation7 + $0x168] sm:$0xff]  ;;  %v2486_v38 = vpack.c.bf16 %v1188_v30, %v1184_v29  ;;  %v2614_v39 = vpack.c.bf16 %v1190_v33, %v1186_v31  ;;  %v1230_v29 = vld [vmem:[#allocation7 + $0x270] sm:$0xff]  ;;  %v1239_v33 = vld [vmem:[#allocation7 + $0x2b8] sm:$0xff] }
 0x14e   :  { %v2488_v40 = vpack.c.bf16 %v1197_v35, %v1193_v34  ;;  %v1233_v30 = vld [vmem:[#allocation7 + $0x288] sm:$0xff] }
 0x14f   :  { %2243 = vmatpush1.bf16.msra.mxu0 %v2242_v41  ;;  %v1192_v41 = vld [vmem:[#allocation7 + $0x140] sm:$0xff]  ;;  %v1237_v31 = vld [vmem:[#allocation7 + $0x2a8] sm:$0xff] }
 0x150   :  { %2467 = vmatpush1.bf16.msra.mxu1 %v2466_v42  ;;  %2469 = vmatprep.subr.bf16.mxu0 %v2468_v43  ;;  %v1196_v42 = vld [vmem:[#allocation7 + $0x160] sm:$0xff]  ;;  %v1194_v43 = vld [vmem:[#allocation7 + $0x150] sm:$0xff]  ;;  %v2508_v36 = vpack.c.bf16 %v1237_v31, %v1233_v30  ;;  %v1275_v30 = vld [vmem:[#allocation7 + $0x3d8] sm:$0xff] }
 0x151   :  { %2597 = vmatprep.subr.bf16.mxu1 %v2596_v47  ;;  %v1205_v47 = vld [vmem:[#allocation7 + $0x1a8] sm:$0xff]  ;;  %v2490_v50 = vpack.c.bf16 %v1196_v42, %v1192_v41  ;;  %v2618_v51 = vpack.c.bf16 %v1198_v45, %v1194_v43  ;;  %v1238_v41 = vld [vmem:[#allocation7 + $0x2b0] sm:$0xff]  ;;  %v1247_v45 = vld [vmem:[#allocation7 + $0x2f8] sm:$0xff] }
 0x152   :  { %858 = vmatmul.mubr.f32.vlgmr.msra.gmra.mrb[0].mxu0 %v109_v53  ;;  %v2492_v52 = vpack.c.bf16 %v1205_v47, %v1201_v46  ;;  %v1241_v42 = vld [vmem:[#allocation7 + $0x2c8] sm:$0xff] }
 0x153   :  { %1142 = vmatmul.mubr.f32.vlgmr.msra.gmra.mrb[0].mxu1 %v109_v53  ;;  %2471 = vmatpush1.bf16.msra.mxu0 %v2470_v54  ;;  %v1200_v53 = vld [vmem:[#allocation7 + $0x180] sm:$0xff]  ;;  %v1245_v43 = vld [vmem:[#allocation7 + $0x2e8] sm:$0xff] }
 0x154   :  { %2599 = vmatpush1.bf16.msra.mxu1 %v2598_v55  ;;  %2473 = vmatprep.subr.bf16.mxu0 %v2472_v56  ;;  %v1204_v54 = vld [vmem:[#allocation7 + $0x1a0] sm:$0xff]  ;;  %v1202_v55 = vld [vmem:[#allocation7 + $0x190] sm:$0xff]  ;;  %v2620_v56 = vpack.c.bf16 %v1207_v49, %v1203_v48  ;;  %v2512_v48 = vpack.c.bf16 %v1245_v43, %v1241_v42  ;;  %v1283_v42 = vld [vmem:[#allocation7 + $0x418] sm:$0xff] }
 0x155   :  { %2601 = vmatprep.subr.bf16.mxu1 %v2600_v60  ;;  %v1211_v60 = vld [vmem:[#allocation7 + $0x1d8] sm:$0xff]  ;;  %v2494_v62 = vpack.c.bf16 %v1204_v54, %v1200_v53  ;;  %v2622_v63 = vpack.c.bf16 %v1206_v57, %v1202_v55  ;;  %v1240_v49 = vld [vmem:[#allocation7 + $0x2c0] sm:$0xff]  ;;  %v1246_v53 = vld [vmem:[#allocation7 + $0x2f0] sm:$0xff] }
 0x156   :  { %v1249_v54 = vld [vmem:[#allocation7 + $0x308] sm:$0xff]  ;;  %v1255_v57 = vld [vmem:[#allocation7 + $0x338] sm:$0xff] }
 0x157   :  { %2475 = vmatpush1.bf16.msra.mxu0 %v2474_v2  ;;  %v1212_v2 = vld [vmem:[#allocation7 + $0x1e0] sm:$0xff]  ;;  %v1253_v55 = vld [vmem:[#allocation7 + $0x328] sm:$0xff] }
 0x158   :  { %2603 = vmatpush1.bf16.msra.mxu1 %v2602_v3  ;;  %2477 = vmatprep.subr.bf16.mxu0 %v2476_v4  ;;  %v1210_v3 = vld [vmem:[#allocation7 + $0x1d0] sm:$0xff]  ;;  %v2624_v4 = vpack.c.bf16 %v1215_v61, %v1211_v60  ;;  %v2498_v10 = vpack.c.bf16 %v1212_v2, %v1208_v1  ;;  %v2516_v60 = vpack.c.bf16 %v1253_v55, %v1249_v54  ;;  %v1248_v61 = vld [vmem:[#allocation7 + $0x300] sm:$0xff]  ;;  %v1257_v2 = vld [vmem:[#allocation7 + $0x348] sm:$0xff] }
 0x159   :  { %2605 = vmatprep.subr.bf16.mxu1 %v2604_v8  ;;  %v1219_v8 = vld [vmem:[#allocation7 + $0x218] sm:$0xff]  ;;  %v2626_v11 = vpack.c.bf16 %v1214_v5, %v1210_v3  ;;  %v1254_v1 = vld [vmem:[#allocation7 + $0x330] sm:$0xff]  ;;  %v1261_v3 = vld [vmem:[#allocation7 + $0x368] sm:$0xff] }
 0x15a   :  { %v1263_v5 = vld [vmem:[#allocation7 + $0x378] sm:$0xff] }
 0x15b   :  { %2479 = vmatpush1.bf16.msra.mxu0 %v2478_v14  ;;  %v1220_v14 = vld [vmem:[#allocation7 + $0x220] sm:$0xff] }
 0x15c   :  { %2607 = vmatpush1.bf16.msra.mxu1 %v2606_v15  ;;  %2481 = vmatprep.subr.bf16.mxu0 %v2480_v16  ;;  %v1218_v15 = vld [vmem:[#allocation7 + $0x210] sm:$0xff]  ;;  %v2628_v16 = vpack.c.bf16 %v1223_v9, %v1219_v8  ;;  %v2502_v22 = vpack.c.bf16 %v1220_v14, %v1216_v13  ;;  %v2520_v8 = vpack.c.bf16 %v1261_v3, %v1257_v2  ;;  %v1256_v9 = vld [vmem:[#allocation7 + $0x340] sm:$0xff]  ;;  %v1265_v14 = vld [vmem:[#allocation7 + $0x388] sm:$0xff] }
 0x15d   :  { %2609 = vmatprep.subr.bf16.mxu1 %v2608_v20  ;;  %v1227_v20 = vld [vmem:[#allocation7 + $0x258] sm:$0xff]  ;;  %v2630_v23 = vpack.c.bf16 %v1222_v17, %v1218_v15  ;;  %v1262_v13 = vld [vmem:[#allocation7 + $0x370] sm:$0xff]  ;;  %v1269_v15 = vld [vmem:[#allocation7 + $0x3a8] sm:$0xff] }
 0x15e   :  { %v1271_v17 = vld [vmem:[#allocation7 + $0x3b8] sm:$0xff]  ;;  %v1293_v3 = vld [vmem:[#allocation7 + $0x468] sm:$0xff] }
 0x15f   :  { %2483 = vmatpush1.bf16.msra.mxu0 %v2482_v26  ;;  %v1228_v26 = vld [vmem:[#allocation7 + $0x260] sm:$0xff] }
 0x160   :  { %2611 = vmatpush1.bf16.msra.mxu1 %v2610_v27  ;;  %2485 = vmatprep.subr.bf16.mxu0 %v2484_v28  ;;  %v1226_v27 = vld [vmem:[#allocation7 + $0x250] sm:$0xff]  ;;  %v2632_v28 = vpack.c.bf16 %v1231_v21, %v1227_v20  ;;  %v2506_v34 = vpack.c.bf16 %v1228_v26, %v1224_v25  ;;  %v2524_v20 = vpack.c.bf16 %v1269_v15, %v1265_v14  ;;  %v1264_v21 = vld [vmem:[#allocation7 + $0x380] sm:$0xff]  ;;  %v1297_v14 = vld [vmem:[#allocation7 + $0x488] sm:$0xff] }
 0x161   :  { %2613 = vmatprep.subr.bf16.mxu1 %v2612_v32  ;;  %v1235_v32 = vld [vmem:[#allocation7 + $0x298] sm:$0xff]  ;;  %v2634_v35 = vpack.c.bf16 %v1230_v29, %v1226_v27  ;;  %v1270_v25 = vld [vmem:[#allocation7 + $0x3b0] sm:$0xff]  ;;  %v1277_v29 = vld [vmem:[#allocation7 + $0x3e8] sm:$0xff] }
 0x163   :  { %2487 = vmatpush1.bf16.msra.mxu0 %v2486_v38  ;;  %v1236_v38 = vld [vmem:[#allocation7 + $0x2a0] sm:$0xff] }
 0x164   :  { %2615 = vmatpush1.bf16.msra.mxu1 %v2614_v39  ;;  %2489 = vmatprep.subr.bf16.mxu0 %v2488_v40  ;;  %v1234_v39 = vld [vmem:[#allocation7 + $0x290] sm:$0xff]  ;;  %v2636_v40 = vpack.c.bf16 %v1239_v33, %v1235_v32  ;;  %v2510_v46 = vpack.c.bf16 %v1236_v38, %v1232_v37  ;;  %v1279_v32 = vld [vmem:[#allocation7 + $0x3f8] sm:$0xff]  ;;  %v1272_v33 = vld [vmem:[#allocation7 + $0x3c0] sm:$0xff] }
 0x165   :  { %2617 = vmatprep.subr.bf16.mxu1 %v2616_v44  ;;  %v1243_v44 = vld [vmem:[#allocation7 + $0x2d8] sm:$0xff]  ;;  %v2638_v47 = vpack.c.bf16 %v1238_v41, %v1234_v39  ;;  %v1274_v37 = vld [vmem:[#allocation7 + $0x3d0] sm:$0xff]  ;;  %v1285_v41 = vld [vmem:[#allocation7 + $0x428] sm:$0xff] }
 0x166   :  { %v1278_v38 = vld [vmem:[#allocation7 + $0x3f0] sm:$0xff] }
 0x167   :  { %2491 = vmatpush1.bf16.msra.mxu0 %v2490_v50  ;;  %v1244_v50 = vld [vmem:[#allocation7 + $0x2e0] sm:$0xff]  ;;  %v2658_v39 = vpack.c.bf16 %v1278_v38, %v1274_v37 }
 0x168   :  { %2619 = vmatpush1.bf16.msra.mxu1 %v2618_v51  ;;  %2493 = vmatprep.subr.bf16.mxu0 %v2492_v52  ;;  %v1242_v51 = vld [vmem:[#allocation7 + $0x2d0] sm:$0xff]  ;;  %v2640_v52 = vpack.c.bf16 %v1247_v45, %v1243_v44  ;;  %v2514_v58 = vpack.c.bf16 %v1244_v50, %v1240_v49  ;;  %v1287_v44 = vld [vmem:[#allocation7 + $0x438] sm:$0xff] }
 0x169   :  { %2621 = vmatprep.subr.bf16.mxu1 %v2620_v56  ;;  %v1251_v56 = vld [vmem:[#allocation7 + $0x318] sm:$0xff]  ;;  %v2642_v59 = vpack.c.bf16 %v1246_v53, %v1242_v51  ;;  %v2660_v45 = vpack.c.bf16 %v1287_v44, %v1283_v42  ;;  %v1317_v42 = vld [vmem:[#allocation7 + $0x528] sm:$0xff] }
 0x16a   :  { %v3136_v49 = vld [vmem:[#allocation5] sm:$0xf] }
 0x16b   :  { %2495 = vmatpush1.bf16.msra.mxu0 %v2494_v62  ;;  %v1252_v62 = vld [vmem:[#allocation7 + $0x320] sm:$0xff]  ;;  %v1319_v44 = vld [vmem:[#allocation7 + $0x538] sm:$0xff] }
 0x16c   :  { %2623 = vmatpush1.bf16.msra.mxu1 %v2622_v63  ;;  %2497 = vmatprep.subr.bf16.mxu0 %v2496_v0  ;;  %v1250_v63 = vld [vmem:[#allocation7 + $0x310] sm:$0xff]  ;;  %v2644_v0 = vpack.c.bf16 %v1255_v57, %v1251_v56  ;;  %v2518_v6 = vpack.c.bf16 %v1252_v62, %v1248_v61  ;;  %v1280_v56 = vld [vmem:[#allocation7 + $0x400] sm:$0xff] }
 0x16d   :  { %2625 = vmatprep.subr.bf16.mxu1 %v2624_v4  ;;  %v1259_v4 = vld [vmem:[#allocation7 + $0x358] sm:$0xff]  ;;  %v2646_v7 = vpack.c.bf16 %v1254_v1, %v1250_v63  ;;  %v1282_v61 = vld [vmem:[#allocation7 + $0x410] sm:$0xff]  ;;  %v1289_v1 = vld [vmem:[#allocation7 + $0x448] sm:$0xff] }
 0x16e   :  { %v1286_v62 = vld [vmem:[#allocation7 + $0x430] sm:$0xff]  ;;  %v2536_v15 = vpack.c.bf16 %v1293_v3, %v1289_v1  ;;  %v1320_v1 = vld [vmem:[#allocation7 + $0x540] sm:$0xff] }
 0x16f   :  { %2499 = vmatpush1.bf16.msra.mxu0 %v2498_v10  ;;  %v1260_v10 = vld [vmem:[#allocation7 + $0x360] sm:$0xff] }
 0x170   :  { %2627 = vmatpush1.bf16.msra.mxu1 %v2626_v11  ;;  %2501 = vmatprep.subr.bf16.mxu0 %v2500_v12  ;;  %v1258_v11 = vld [vmem:[#allocation7 + $0x350] sm:$0xff]  ;;  %v2648_v12 = vpack.c.bf16 %v1263_v5, %v1259_v4  ;;  %v2522_v18 = vpack.c.bf16 %v1260_v10, %v1256_v9  ;;  %v1291_v4 = vld [vmem:[#allocation7 + $0x458] sm:$0xff]  ;;  %v1288_v9 = vld [vmem:[#allocation7 + $0x440] sm:$0xff] }
 0x171   :  { %2629 = vmatprep.subr.bf16.mxu1 %v2628_v16  ;;  %v1267_v16 = vld [vmem:[#allocation7 + $0x398] sm:$0xff]  ;;  %v2650_v19 = vpack.c.bf16 %v1262_v13, %v1258_v11  ;;  %v1292_v10 = vld [vmem:[#allocation7 + $0x460] sm:$0xff]  ;;  %v1294_v13 = vld [vmem:[#allocation7 + $0x470] sm:$0xff] }
 0x172   :  { %v1295_v5 = vld [vmem:[#allocation7 + $0x478] sm:$0xff] }
 0x173   :  { %2503 = vmatpush1.bf16.msra.mxu0 %v2502_v22  ;;  %v1268_v22 = vld [vmem:[#allocation7 + $0x3a0] sm:$0xff] }
 0x174   :  { %2631 = vmatpush1.bf16.msra.mxu1 %v2630_v23  ;;  %2505 = vmatprep.subr.bf16.mxu0 %v2504_v24  ;;  %v2652_v23 = vpack.c.bf16 %v1271_v17, %v1267_v16  ;;  %v1266_v24 = vld [vmem:[#allocation7 + $0x390] sm:$0xff]  ;;  %v2526_v26 = vpack.c.bf16 %v1268_v22, %v1264_v21  ;;  %v2664_v16 = vpack.c.bf16 %v1295_v5, %v1291_v4  ;;  %v1301_v17 = vld [vmem:[#allocation7 + $0x4a8] sm:$0xff] }
 0x175   :  { %2633 = vmatprep.subr.bf16.mxu1 %v2632_v28  ;;  %v2654_v27 = vpack.c.bf16 %v1270_v25, %v1266_v24  ;;  %v1273_v28 = vld [vmem:[#allocation7 + $0x3c8] sm:$0xff]  ;;  %v2538_v21 = vpack.c.bf16 %v1292_v10, %v1288_v9  ;;  %v1300_v24 = vld [vmem:[#allocation7 + $0x4a0] sm:$0xff]  ;;  %v2540_v25 = vpack.c.bf16 %v1301_v17, %v1297_v14  ;;  %v1322_v5 = vld [vmem:[#allocation7 + $0x550] sm:$0xff] }
 0x176   :  { %v2528_v31 = vpack.c.bf16 %v1277_v29, %v1273_v28  ;;  %v1302_v28 = vld [vmem:[#allocation7 + $0x4b0] sm:$0xff]  ;;  %v1305_v29 = vld [vmem:[#allocation7 + $0x4c8] sm:$0xff]  ;;  %v1331_v9 = vld [vmem:[#allocation7 + $0x598] sm:$0xff] }
 0x177   :  { %2507 = vmatpush1.bf16.msra.mxu0 %v2506_v34  ;;  %v1276_v34 = vld [vmem:[#allocation7 + $0x3e0] sm:$0xff]  ;;  %v1335_v10 = vld [vmem:[#allocation7 + $0x5b8] sm:$0xff]  ;;  %v1330_v17 = vld [vmem:[#allocation7 + $0x590] sm:$0xff] }
 0x178   :  { %2635 = vmatpush1.bf16.msra.mxu1 %v2634_v35  ;;  %2509 = vmatprep.subr.bf16.mxu0 %v2508_v36  ;;  %v2656_v35 = vpack.c.bf16 %v1279_v32, %v1275_v30  ;;  %v2530_v36 = vpack.c.bf16 %v1276_v34, %v1272_v33  ;;  %v1309_v30 = vld [vmem:[#allocation7 + $0x4e8] sm:$0xff]  ;;  %v1311_v32 = vld [vmem:[#allocation7 + $0x4f8] sm:$0xff]  ;;  %v1332_v14 = vld [vmem:[#allocation7 + $0x5a0] sm:$0xff] }
 0x179   :  { %2637 = vmatprep.subr.bf16.mxu1 %v2636_v40  ;;  %v1281_v40 = vld [vmem:[#allocation7 + $0x408] sm:$0xff]  ;;  %v2544_v37 = vpack.c.bf16 %v1309_v30, %v1305_v29  ;;  %v1338_v29 = vld [vmem:[#allocation7 + $0x5d0] sm:$0xff] }
 0x17a   :  { %v2532_v43 = vpack.c.bf16 %v1285_v41, %v1281_v40  ;;  %v1310_v40 = vld [vmem:[#allocation7 + $0x4f0] sm:$0xff]  ;;  %v1313_v41 = vld [vmem:[#allocation7 + $0x508] sm:$0xff] }
 0x17b   :  { %2511 = vmatpush1.bf16.msra.mxu0 %v2510_v46  ;;  %v560_v46 = vlaneseq  ;;  %v1342_v30 = vld [vmem:[#allocation7 + $0x5f0] sm:$0xff] }
 0x17c   :  { %2639 = vmatpush1.bf16.msra.mxu1 %v2638_v47  ;;  %2513 = vmatprep.subr.bf16.mxu0 %v2512_v48 }
 0x17d   :  { %2641 = vmatprep.subr.bf16.mxu1 %v2640_v52  ;;  %v3133_v47 = vshrl.u32 %v560_v46, 7 }
 0x17f   :  { %2515 = vmatpush1.bf16.msra.mxu0 %v2514_v58  ;;  %v562_v48 = vsub.s32 0, %v3133_v47  ;;  %v566_v50 = vsub.s32 1, %v3133_v47  ;;  %v574_v51 = vsub.s32 3, %v3133_v47 }
 0x180   :  { %2643 = vmatpush1.bf16.msra.mxu1 %v2642_v59  ;;  %2517 = vmatprep.subr.bf16.mxu0 %v2516_v60  ;;  %v1284_v60 = vld [vmem:[#allocation7 + $0x420] sm:$0xff] }
 0x181   :  { %2645 = vmatprep.subr.bf16.mxu1 %v2644_v0  ;;  %v563_v52 = vrot.slane %v3136_v49, %v562_v48  ;;  %v567_v53 = vrot.slane %v3136_v49, %v566_v50  ;;  %v575_v54 = vrot.slane %v3136_v49, %v574_v51 }
 0x183   :  { %2519 = vmatpush1.bf16.msra.mxu0 %v2518_v6 }
 0x184   :  { %2647 = vmatpush1.bf16.msra.mxu1 %v2646_v7  ;;  %2521 = vmatprep.subr.bf16.mxu0 %v2520_v8  ;;  %v2534_v7 = vpack.c.bf16 %v1284_v60, %v1280_v56  ;;  %v2662_v8 = vpack.c.bf16 %v1286_v62, %v1282_v61  ;;  %v1314_v56 = vld [vmem:[#allocation7 + $0x510] sm:$0xff]  ;;  %v1325_v60 = vld [vmem:[#allocation7 + $0x568] sm:$0xff]  ;;  %v1323_v61 = vld [vmem:[#allocation7 + $0x558] sm:$0xff] }
 0x185   :  { %2649 = vmatprep.subr.bf16.mxu1 %v2648_v12  ;;  %v1290_v12 = vld [vmem:[#allocation7 + $0x450] sm:$0xff]  ;;  %v1327_v62 = vld [vmem:[#allocation7 + $0x578] sm:$0xff] }
 0x186   :  { %v2666_v22 = vpack.c.bf16 %v1294_v13, %v1290_v12  ;;  %v2680_v4 = vpack.c.bf16 %v1327_v62, %v1323_v61  ;;  %v1328_v13 = vld [vmem:[#allocation7 + $0x580] sm:$0xff]  ;;  %v1361_v61 = vld [vmem:[#allocation7 + $0x688] sm:$0xff] }
 0x187   :  { %2523 = vmatpush1.bf16.msra.mxu0 %v2522_v18  ;;  %v1299_v18 = vld [vmem:[#allocation7 + $0x498] sm:$0xff]  ;;  %v1365_v62 = vld [vmem:[#allocation7 + $0x6a8] sm:$0xff] }
 0x188   :  { %2651 = vmatpush1.bf16.msra.mxu1 %v2650_v19  ;;  %2525 = vmatprep.subr.bf16.mxu0 %v2524_v20  ;;  %v1303_v19 = vld [vmem:[#allocation7 + $0x4b8] sm:$0xff] }
 0x189   :  { %2653 = vmatprep.subr.bf16.mxu1 %v2652_v23  ;;  %v1296_v23 = vld [vmem:[#allocation7 + $0x480] sm:$0xff] }
 0x18a   :  { %v2542_v33 = vpack.c.bf16 %v1300_v24, %v1296_v23  ;;  %v2558_v23 = vpack.c.bf16 %v1332_v14, %v1328_v13 }
 0x18b   :  { %2527 = vmatpush1.bf16.msra.mxu0 %v2526_v26  ;;  %v2668_v26 = vpack.c.bf16 %v1303_v19, %v1299_v18  ;;  %v1334_v18 = vld [vmem:[#allocation7 + $0x5b0] sm:$0xff]  ;;  %v1337_v19 = vld [vmem:[#allocation7 + $0x5c8] sm:$0xff] }
 0x18c   :  { %2655 = vmatpush1.bf16.msra.mxu1 %v2654_v27  ;;  %2529 = vmatprep.subr.bf16.mxu0 %v2528_v31  ;;  %v1298_v27 = vld [vmem:[#allocation7 + $0x490] sm:$0xff]  ;;  %v1307_v31 = vld [vmem:[#allocation7 + $0x4d8] sm:$0xff]  ;;  %v2686_v24 = vpack.c.bf16 %v1334_v18, %v1330_v17 }
 0x18d   :  { %2657 = vmatprep.subr.bf16.mxu1 %v2656_v35  ;;  %v2670_v34 = vpack.c.bf16 %v1302_v28, %v1298_v27  ;;  %v1304_v35 = vld [vmem:[#allocation7 + $0x4c0] sm:$0xff]  ;;  %v2672_v38 = vpack.c.bf16 %v1311_v32, %v1307_v31  ;;  %v1345_v31 = vld [vmem:[#allocation7 + $0x608] sm:$0xff] }
 0x18e   :  { %v1349_v32 = vld [vmem:[#allocation7 + $0x628] sm:$0xff] }
 0x18f   :  { %2531 = vmatpush1.bf16.msra.mxu0 %v2530_v36  ;;  %v1308_v36 = vld [vmem:[#allocation7 + $0x4e0] sm:$0xff] }
 0x190   :  { %2659 = vmatpush1.bf16.msra.mxu1 %v2658_v39  ;;  %2533 = vmatprep.subr.bf16.mxu0 %v2532_v43  ;;  %v1306_v39 = vld [vmem:[#allocation7 + $0x4d0] sm:$0xff]  ;;  %v1315_v43 = vld [vmem:[#allocation7 + $0x518] sm:$0xff] }
 0x191   :  { %2661 = vmatprep.subr.bf16.mxu1 %v2660_v45  ;;  %v2546_v45 = vpack.c.bf16 %v1308_v36, %v1304_v35  ;;  %v2674_v46 = vpack.c.bf16 %v1310_v40, %v1306_v39  ;;  %v2690_v36 = vpack.c.bf16 %v1342_v30, %v1338_v29  ;;  %v2564_v39 = vpack.c.bf16 %v1349_v32, %v1345_v31  ;;  %v1378_v31 = vld [vmem:[#allocation7 + $0x710] sm:$0xff] }
 0x192   :  { %v1382_v32 = vld [vmem:[#allocation7 + $0x730] sm:$0xff] }
 0x225   :  { %v859_v55 = vpop.f32.mrb[0].mxu0 }
 0x226   :  { %v2788_v57 = vadd.f32 %v859_v55, %v563_v52  ;;  %v3149_v58 = vpop.f32.mrb[0].mxu1  ;;  %v861_v59 = vpop.f32.mrb[1].mxu0  ;;  %v1312_v52 = vld [vmem:[#allocation7 + $0x500] sm:$0xff]  ;;  %v2676_v55 = vpack.c.bf16 %v1319_v44, %v1315_v43  ;;  %v1353_v43 = vld [vmem:[#allocation7 + $0x648] sm:$0xff] }
 0x227   :  { %v2789_v63 = vadd.f32 %v861_v59, %v567_v53  ;;  %v1145_v0 = vpop.f32.mrb[1].mxu1  ;;  %v1316_v53 = vld [vmem:[#allocation7 + $0x520] sm:$0xff]  ;;  %v1321_v59 = vld [vmem:[#allocation7 + $0x548] sm:$0xff] }
 0x228   :  { %v2791_v2 = vadd.f32 %v1145_v0, %v575_v54  ;;  %v1148_v11 = vmax.f32 %v2788_v57, 0.0  ;;  %v2548_v54 = vpack.c.bf16 %v1317_v42, %v1313_v41  ;;  %v1318_v57 = vld [vmem:[#allocation7 + $0x530] sm:$0xff]  ;;  %v2552_v3 = vpack.c.bf16 %v1325_v60, %v1321_v59  ;;  %v1357_v44 = vld [vmem:[#allocation7 + $0x668] sm:$0xff] }
 0x229   :  { %v1149_v6 = vmax.f32 %v2789_v63, 0.0  ;;  %v2550_v63 = vpack.c.bf16 %v1316_v53, %v1312_v52  ;;  %v2678_v0 = vpack.c.bf16 %v1318_v57, %v1314_v56  ;;  %v1346_v41 = vld [vmem:[#allocation7 + $0x610] sm:$0xff]  ;;  %v2568_v56 = vpack.c.bf16 %v1357_v44, %v1353_v43 }
 0x22a   :  { %v1151_v20 = vmax.f32 %v2791_v2, 0.0  ;;  %v1324_v2 = vld [vmem:[#allocation7 + $0x560] sm:$0xff]  ;;  %v1350_v42 = vld [vmem:[#allocation7 + $0x630] sm:$0xff] }
 0x22b   :  { %1494 = vmatprep.mubr.f32.mxu0 %v1149_v6  ;;  %1636 = vmatprep.mubr.f32.mxu1 %v1149_v6  ;;  %v1326_v6 = vld [vmem:[#allocation7 + $0x570] sm:$0xff]  ;;  %v2694_v53 = vpack.c.bf16 %v1350_v42, %v1346_v41 }
 0x22c   :  { %1495 = vmatmul.mubr.f32.vlgmr.msra.gmra.mrb[2].mxu0 %v1148_v11  ;;  %1637 = vmatmul.mubr.f32.vlgmr.msra.gmra.mrb[2].mxu1 %v1148_v11  ;;  %v2554_v11 = vpack.c.bf16 %v1324_v2, %v1320_v1  ;;  %v2682_v12 = vpack.c.bf16 %v1326_v6, %v1322_v5  ;;  %v1354_v59 = vld [vmem:[#allocation7 + $0x650] sm:$0xff]  ;;  %v2572_v5 = vpack.c.bf16 %v1365_v62, %v1361_v61 }
 0x22d   :  { %2535 = vmatpush1.bf16.msra.mxu0 %v2534_v7  ;;  %2663 = vmatpush1.bf16.msra.mxu1 %v2662_v8  ;;  %v1329_v7 = vld [vmem:[#allocation7 + $0x588] sm:$0xff]  ;;  %v1358_v60 = vld [vmem:[#allocation7 + $0x670] sm:$0xff] }
 0x22e   :  { %1565 = vmatprep.mubr.f32.mxu0 %v1151_v20  ;;  %1707 = vmatprep.mubr.f32.mxu1 %v1151_v20  ;;  %v1333_v8 = vld [vmem:[#allocation7 + $0x5a8] sm:$0xff]  ;;  %v2698_v2 = vpack.c.bf16 %v1358_v60, %v1354_v59  ;;  %v1386_v43 = vld [vmem:[#allocation7 + $0x750] sm:$0xff]  ;;  %v570_v59 = vsub.s32 2, %v3133_v47  ;;  %v1949_v47 = vld [vmem:[#allocation11] ss:$0 sm:$0xff] }
 0x22f   :  { %2537 = vmatprep.subr.bf16.mxu0 %v2536_v15  ;;  %2665 = vmatprep.subr.bf16.mxu1 %v2664_v16  ;;  %v2556_v15 = vpack.c.bf16 %v1333_v8, %v1329_v7  ;;  %v2684_v16 = vpack.c.bf16 %v1335_v10, %v1331_v9  ;;  %v1341_v20 = vld [vmem:[#allocation7 + $0x5e8] sm:$0xff]  ;;  %v1362_v7 = vld [vmem:[#allocation7 + $0x690] sm:$0xff] }
 0x230   :  { %v2560_v27 = vpack.c.bf16 %v1341_v20, %v1337_v19  ;;  %v1366_v8 = vld [vmem:[#allocation7 + $0x6b0] sm:$0xff]  ;;  %v1369_v9 = vld [vmem:[#allocation7 + $0x6c8] sm:$0xff] }
 0x231   :  { %2539 = vmatpush1.bf16.msra.mxu0 %v2538_v21  ;;  %2667 = vmatpush1.bf16.msra.mxu1 %v2666_v22  ;;  %v1339_v21 = vld [vmem:[#allocation7 + $0x5d8] sm:$0xff]  ;;  %v1373_v10 = vld [vmem:[#allocation7 + $0x6e8] sm:$0xff]  ;;  %v2702_v14 = vpack.c.bf16 %v1366_v8, %v1362_v7  ;;  %v1370_v19 = vld [vmem:[#allocation7 + $0x6d0] sm:$0xff]  ;;  %v571_v8 = vrot.slane %v3136_v49, %v570_v59 }
 0x232   :  { %2541 = vmatprep.subr.bf16.mxu0 %v2540_v25  ;;  %2669 = vmatprep.subr.bf16.mxu1 %v2668_v26  ;;  %v1343_v22 = vld [vmem:[#allocation7 + $0x5f8] sm:$0xff]  ;;  %v1336_v25 = vld [vmem:[#allocation7 + $0x5c0] sm:$0xff]  ;;  %v2576_v17 = vpack.c.bf16 %v1373_v10, %v1369_v9  ;;  %v1374_v20 = vld [vmem:[#allocation7 + $0x6f0] sm:$0xff] }
 0x233   :  { %v1340_v26 = vld [vmem:[#allocation7 + $0x5e0] sm:$0xff]  ;;  %v2688_v28 = vpack.c.bf16 %v1343_v22, %v1339_v21  ;;  %v1377_v21 = vld [vmem:[#allocation7 + $0x708] sm:$0xff]  ;;  %v1390_v44 = vld [vmem:[#allocation7 + $0x770] sm:$0xff] }
 0x234   :  { %v2562_v35 = vpack.c.bf16 %v1340_v26, %v1336_v25  ;;  %v1381_v22 = vld [vmem:[#allocation7 + $0x728] sm:$0xff]  ;;  %v2706_v26 = vpack.c.bf16 %v1374_v20, %v1370_v19  ;;  %v1394_v62 = vld [vmem:[#allocation7 + $0x790] sm:$0xff]  ;;  %v1404_v7 = vld [vmem:[#allocation7 + $0x7e0] sm:$0xff] }
 0x235   :  { %2543 = vmatpush1.bf16.msra.mxu0 %v2542_v33  ;;  %2671 = vmatpush1.bf16.msra.mxu1 %v2670_v34  ;;  %v1347_v33 = vld [vmem:[#allocation7 + $0x618] sm:$0xff]  ;;  %v2580_v29 = vpack.c.bf16 %v1381_v22, %v1377_v21  ;;  %v1718_v19 = vld [vmem:[#allocation10] sm:$0xff]  ;;  %v1719_v20 = vld [vmem:[#allocation10 + $0x8] sm:$0xff]  ;;  %v2790_v21 = vadd.f32 %v3149_v58, %v571_v8 }
 0x236   :  { %2545 = vmatprep.subr.bf16.mxu0 %v2544_v37  ;;  %2673 = vmatprep.subr.bf16.mxu1 %v2672_v38  ;;  %v1351_v34 = vld [vmem:[#allocation7 + $0x638] sm:$0xff]  ;;  %v1344_v37 = vld [vmem:[#allocation7 + $0x600] sm:$0xff] }
 0x237   :  { %v1348_v38 = vld [vmem:[#allocation7 + $0x620] sm:$0xff]  ;;  %v2692_v40 = vpack.c.bf16 %v1351_v34, %v1347_v33  ;;  %v1385_v33 = vld [vmem:[#allocation7 + $0x748] sm:$0xff] }
 0x238   :  { %v2566_v52 = vpack.c.bf16 %v1348_v38, %v1344_v37  ;;  %v1389_v34 = vld [vmem:[#allocation7 + $0x768] sm:$0xff]  ;;  %v2710_v38 = vpack.c.bf16 %v1382_v32, %v1378_v31  ;;  %v1720_v31 = vld [vmem:[#allocation10 + $0x10] sm:$0xff]  ;;  %v1721_v32 = vld [vmem:[#allocation10 + $0x18] sm:$0xff] }
 0x239   :  { %2547 = vmatpush1.bf16.msra.mxu0 %v2546_v45  ;;  %2675 = vmatpush1.bf16.msra.mxu1 %v2674_v46  ;;  %v1355_v45 = vld [vmem:[#allocation7 + $0x658] sm:$0xff]  ;;  %v2584_v41 = vpack.c.bf16 %v1389_v34, %v1385_v33  ;;  %v1150_v33 = vmax.f32 %v2790_v21, 0.0 }
 0x23a   :  { %2549 = vmatprep.subr.bf16.mxu0 %v2548_v54  ;;  %2677 = vmatprep.subr.bf16.mxu1 %v2676_v55  ;;  %v1359_v46 = vld [vmem:[#allocation7 + $0x678] sm:$0xff]  ;;  %v1352_v54 = vld [vmem:[#allocation7 + $0x640] sm:$0xff] }
 0x23b   :  { %v1356_v55 = vld [vmem:[#allocation7 + $0x660] sm:$0xff]  ;;  %v2696_v57 = vpack.c.bf16 %v1359_v46, %v1355_v45  ;;  %v1393_v45 = vld [vmem:[#allocation7 + $0x788] sm:$0xff] }
 0x23c   :  { %v2570_v1 = vpack.c.bf16 %v1356_v55, %v1352_v54  ;;  %v1397_v46 = vld [vmem:[#allocation7 + $0x7a8] sm:$0xff]  ;;  %v2714_v55 = vpack.c.bf16 %v1390_v44, %v1386_v43 }
 0x23d   :  { %2551 = vmatpush1.bf16.msra.mxu0 %v2550_v63  ;;  %2679 = vmatpush1.bf16.msra.mxu1 %v2678_v0  ;;  %v1363_v63 = vld [vmem:[#allocation7 + $0x698] sm:$0xff]  ;;  %v2588_v60 = vpack.c.bf16 %v1397_v46, %v1393_v45  ;;  %v1722_v43 = vld [vmem:[#allocation10 + $0x20] sm:$0xff]  ;;  %v1723_v44 = vld [vmem:[#allocation10 + $0x28] sm:$0xff] }
 0x23e   :  { %2553 = vmatprep.subr.bf16.mxu0 %v2552_v3  ;;  %2681 = vmatprep.subr.bf16.mxu1 %v2680_v4  ;;  %v1367_v0 = vld [vmem:[#allocation7 + $0x6b8] sm:$0xff]  ;;  %v1360_v3 = vld [vmem:[#allocation7 + $0x680] sm:$0xff] }
 0x23f   :  { %v1364_v4 = vld [vmem:[#allocation7 + $0x6a0] sm:$0xff]  ;;  %v2700_v6 = vpack.c.bf16 %v1367_v0, %v1363_v63  ;;  %v1398_v63 = vld [vmem:[#allocation7 + $0x7b0] sm:$0xff]  ;;  %v1401_v0 = vld [vmem:[#allocation7 + $0x7c8] sm:$0xff] }
 0x240   :  { %v2574_v13 = vpack.c.bf16 %v1364_v4, %v1360_v3  ;;  %v1407_v3 = vld [vmem:[#allocation7 + $0x7f8] sm:$0xff] }
 0x241   :  { %2555 = vmatpush1.bf16.msra.mxu0 %v2554_v11  ;;  %2683 = vmatpush1.bf16.msra.mxu1 %v2682_v12  ;;  %v1371_v11 = vld [vmem:[#allocation7 + $0x6d8] sm:$0xff] }
 0x242   :  { %2557 = vmatprep.subr.bf16.mxu0 %v2556_v15  ;;  %2685 = vmatprep.subr.bf16.mxu1 %v2684_v16  ;;  %v1375_v12 = vld [vmem:[#allocation7 + $0x6f8] sm:$0xff]  ;;  %v1368_v15 = vld [vmem:[#allocation7 + $0x6c0] sm:$0xff] }
 0x243   :  { %v1372_v16 = vld [vmem:[#allocation7 + $0x6e0] sm:$0xff]  ;;  %v2704_v18 = vpack.c.bf16 %v1375_v12, %v1371_v11  ;;  %v1402_v11 = vld [vmem:[#allocation7 + $0x7d0] sm:$0xff] }
 0x244   :  { %v2578_v25 = vpack.c.bf16 %v1372_v16, %v1368_v15  ;;  %v1406_v12 = vld [vmem:[#allocation7 + $0x7f0] sm:$0xff]  ;;  %v1766_v15 = vld [vmem:[#allocation10 + $0x180] sm:$0xff] }
 0x245   :  { %2559 = vmatpush1.bf16.msra.mxu0 %v2558_v23  ;;  %2687 = vmatpush1.bf16.msra.mxu1 %v2686_v24  ;;  %v1379_v23 = vld [vmem:[#allocation7 + $0x718] sm:$0xff]  ;;  %v1767_v16 = vld [vmem:[#allocation10 + $0x188] sm:$0xff] }
 0x246   :  { %2561 = vmatprep.subr.bf16.mxu0 %v2560_v27  ;;  %2689 = vmatprep.subr.bf16.mxu1 %v2688_v28  ;;  %v1383_v24 = vld [vmem:[#allocation7 + $0x738] sm:$0xff]  ;;  %v1376_v27 = vld [vmem:[#allocation7 + $0x700] sm:$0xff]  ;;  %v2756_v22 = vpack.c.bf16 %v1767_v16, %v1766_v15  ;;  %v1759_v15 = vld [vmem:[#allocation10 + $0x148] sm:$0xff] }
 0x247   :  { %v1380_v28 = vld [vmem:[#allocation7 + $0x720] sm:$0xff]  ;;  %v2708_v30 = vpack.c.bf16 %v1383_v24, %v1379_v23  ;;  %v1751_v24 = vld [vmem:[#allocation10 + $0x108] sm:$0xff]  ;;  %v1744_v16 = vld [vmem:[#allocation10 + $0xd0] sm:$0xff] }
 0x248   :  { %v2582_v37 = vpack.c.bf16 %v1380_v28, %v1376_v27  ;;  %v1750_v23 = vld [vmem:[#allocation10 + $0x100] sm:$0xff]  ;;  %v1768_v27 = vld [vmem:[#allocation10 + $0x190] sm:$0xff]  ;;  %v1769_v28 = vld [vmem:[#allocation10 + $0x198] sm:$0xff] }
 0x249   :  { %2563 = vmatpush1.bf16.msra.mxu0 %v2562_v35  ;;  %2691 = vmatpush1.bf16.msra.mxu1 %v2690_v36  ;;  %v1387_v35 = vld [vmem:[#allocation7 + $0x758] sm:$0xff]  ;;  %v2760_v34 = vpack.c.bf16 %v1769_v28, %v1768_v27  ;;  %v1746_v27 = vld [vmem:[#allocation10 + $0xe0] sm:$0xff]  ;;  %v1747_v28 = vld [vmem:[#allocation10 + $0xe8] sm:$0xff] }
 0x24a   :  { %2565 = vmatprep.subr.bf16.mxu0 %v2564_v39  ;;  %2693 = vmatprep.subr.bf16.mxu1 %v2692_v40  ;;  %v1391_v36 = vld [vmem:[#allocation7 + $0x778] sm:$0xff]  ;;  %v1384_v39 = vld [vmem:[#allocation7 + $0x740] sm:$0xff] }
 0x24b   :  { %v1388_v40 = vld [vmem:[#allocation7 + $0x760] sm:$0xff]  ;;  %v2712_v42 = vpack.c.bf16 %v1391_v36, %v1387_v35  ;;  %v1752_v35 = vld [vmem:[#allocation10 + $0x110] sm:$0xff] }
 0x24c   :  { %v2586_v54 = vpack.c.bf16 %v1388_v40, %v1384_v39  ;;  %v1753_v36 = vld [vmem:[#allocation10 + $0x118] sm:$0xff]  ;;  %v1770_v39 = vld [vmem:[#allocation10 + $0x1a0] sm:$0xff]  ;;  %v1771_v40 = vld [vmem:[#allocation10 + $0x1a8] sm:$0xff] }
 0x24d   :  { %2567 = vmatpush1.bf16.msra.mxu0 %v2566_v52  ;;  %2695 = vmatpush1.bf16.msra.mxu1 %v2694_v53  ;;  %v1395_v52 = vld [vmem:[#allocation7 + $0x798] sm:$0xff]  ;;  %v2764_v46 = vpack.c.bf16 %v1771_v40, %v1770_v39 }
 0x24e   :  { %2569 = vmatprep.subr.bf16.mxu0 %v2568_v56  ;;  %2697 = vmatprep.subr.bf16.mxu1 %v2696_v57  ;;  %v1399_v53 = vld [vmem:[#allocation7 + $0x7b8] sm:$0xff]  ;;  %v1392_v56 = vld [vmem:[#allocation7 + $0x780] sm:$0xff] }
 0x24f   :  { %v1396_v57 = vld [vmem:[#allocation7 + $0x7a0] sm:$0xff]  ;;  %v2716_v61 = vpack.c.bf16 %v1399_v53, %v1395_v52  ;;  %v1755_v53 = vld [vmem:[#allocation10 + $0x128] sm:$0xff]  ;;  %v1748_v40 = vld [vmem:[#allocation10 + $0xf0] sm:$0xff] }
 0x250   :  { %v2590_v4 = vpack.c.bf16 %v1396_v57, %v1392_v56  ;;  %v1754_v52 = vld [vmem:[#allocation10 + $0x120] sm:$0xff]  ;;  %v1772_v56 = vld [vmem:[#allocation10 + $0x1b0] sm:$0xff]  ;;  %v1773_v57 = vld [vmem:[#allocation10 + $0x1b8] sm:$0xff] }
 0x251   :  { %2571 = vmatpush1.bf16.msra.mxu0 %v2570_v1  ;;  %2699 = vmatpush1.bf16.msra.mxu1 %v2698_v2  ;;  %v1405_v1 = vld [vmem:[#allocation7 + $0x7e8] sm:$0xff]  ;;  %v1403_v2 = vld [vmem:[#allocation7 + $0x7d8] sm:$0xff] }
 0x252   :  { %2573 = vmatprep.subr.bf16.mxu0 %v2572_v5  ;;  %2701 = vmatprep.subr.bf16.mxu1 %v2700_v6  ;;  %v2718_v5 = vpack.c.bf16 %v1398_v63, %v1394_v62  ;;  %v1400_v6 = vld [vmem:[#allocation7 + $0x7c0] sm:$0xff]  ;;  %v2592_v9 = vpack.c.bf16 %v1405_v1, %v1401_v0  ;;  %v2720_v10 = vpack.c.bf16 %v1407_v3, %v1403_v2  ;;  %v1724_v62 = vld [vmem:[#allocation10 + $0x30] sm:$0xff] }
 0x253   :  { %v1725_v63 = vld [vmem:[#allocation10 + $0x38] sm:$0xff]  ;;  %v2768_v1 = vpack.c.bf16 %v1773_v57, %v1772_v56  ;;  %v1756_v2 = vld [vmem:[#allocation10 + $0x130] sm:$0xff] }
 0x254   :  { %v1757_v3 = vld [vmem:[#allocation10 + $0x138] sm:$0xff]  ;;  %v2738_v8 = vpack.c.bf16 %v1725_v63, %v1724_v62 }
 0x255   :  { %2575 = vmatpush1.bf16.msra.mxu0 %v2574_v13  ;;  %2703 = vmatpush1.bf16.msra.mxu1 %v2702_v14  ;;  %v1734_v13 = vld [vmem:[#allocation10 + $0x80] sm:$0xff]  ;;  %v1735_v14 = vld [vmem:[#allocation10 + $0x88] sm:$0xff]  ;;  %v1408_v57 = vld [vmem:[#allocation8] sm:$0xf] }
 0x256   :  { %2577 = vmatprep.subr.bf16.mxu0 %v2576_v17  ;;  %2705 = vmatprep.subr.bf16.mxu1 %v2704_v18  ;;  %v2594_v17 = vpack.c.bf16 %v1404_v7, %v1400_v6  ;;  %v2722_v18 = vpack.c.bf16 %v1406_v12, %v1402_v11  ;;  %v2724_v49 = vpack.c.bf16 %v1735_v14, %v1734_v13  ;;  %v1774_v6 = vld [vmem:[#allocation10 + $0x1c0] sm:$0xff]  ;;  %v1775_v7 = vld [vmem:[#allocation10 + $0x1c8] sm:$0xff] }
 0x257   :  { %v1727_v11 = vld [vmem:[#allocation10 + $0x48] sm:$0xff]  ;;  %v2772_v13 = vpack.c.bf16 %v1775_v7, %v1774_v6  ;;  %v1758_v14 = vld [vmem:[#allocation10 + $0x140] sm:$0xff]  ;;  %v1417_v62 = vrot.slane %v1408_v57, %v566_v50  ;;  %v1425_v63 = vrot.slane %v1408_v57, %v574_v51 }
 0x258   :  { %v2774_v21 = vpack.c.bf16 %v1759_v15, %v1758_v14 }
 0x259   :  { %2579 = vmatpush1.bf16.msra.mxu0 %v2578_v25  ;;  %2707 = vmatpush1.bf16.msra.mxu1 %v2706_v26  ;;  %v1736_v25 = vld [vmem:[#allocation10 + $0x90] sm:$0xff]  ;;  %v1737_v26 = vld [vmem:[#allocation10 + $0x98] sm:$0xff] }
 0x25a   :  { %2581 = vmatprep.subr.bf16.mxu0 %v2580_v29  ;;  %2709 = vmatprep.subr.bf16.mxu1 %v2708_v30  ;;  %v2726_v29 = vpack.c.bf16 %v1719_v20, %v1718_v19  ;;  %v2758_v30 = vpack.c.bf16 %v1751_v24, %v1750_v23  ;;  %v2728_v58 = vpack.c.bf16 %v1737_v26, %v1736_v25  ;;  %v1777_v19 = vld [vmem:[#allocation10 + $0x1d8] sm:$0xff]  ;;  %v1760_v25 = vld [vmem:[#allocation10 + $0x150] sm:$0xff] }
 0x25b   :  { %v1761_v26 = vld [vmem:[#allocation10 + $0x158] sm:$0xff] }
 0x25d   :  { %2583 = vmatpush1.bf16.msra.mxu0 %v2582_v37  ;;  %2711 = vmatpush1.bf16.msra.mxu1 %v2710_v38  ;;  %v1738_v37 = vld [vmem:[#allocation10 + $0xa0] sm:$0xff]  ;;  %v1739_v38 = vld [vmem:[#allocation10 + $0xa8] sm:$0xff] }
 0x25e   :  { %2585 = vmatprep.subr.bf16.mxu0 %v2584_v41  ;;  %2713 = vmatprep.subr.bf16.mxu1 %v2712_v42  ;;  %v2730_v41 = vpack.c.bf16 %v1721_v32, %v1720_v31  ;;  %v2762_v42 = vpack.c.bf16 %v1753_v36, %v1752_v35  ;;  %v2732_v45 = vpack.c.bf16 %v1739_v38, %v1738_v37  ;;  %v1731_v35 = vld [vmem:[#allocation10 + $0x68] sm:$0xff]  ;;  %v1762_v36 = vld [vmem:[#allocation10 + $0x160] sm:$0xff] }
 0x25f   :  { %v2778_v32 = vpack.c.bf16 %v1761_v26, %v1760_v25  ;;  %v1763_v38 = vld [vmem:[#allocation10 + $0x168] sm:$0xff] }
 0x260   :  { %v2782_v39 = vpack.c.bf16 %v1763_v38, %v1762_v36 }
 0x261   :  { %2587 = vmatpush1.bf16.msra.mxu0 %v2586_v54  ;;  %2715 = vmatpush1.bf16.msra.mxu1 %v2714_v55  ;;  %v1740_v54 = vld [vmem:[#allocation10 + $0xb0] sm:$0xff]  ;;  %v1741_v55 = vld [vmem:[#allocation10 + $0xb8] sm:$0xff] }
 0x262   :  { %2589 = vmatprep.subr.bf16.mxu0 %v2588_v60  ;;  %2717 = vmatprep.subr.bf16.mxu1 %v2716_v61  ;;  %v2734_v60 = vpack.c.bf16 %v1723_v44, %v1722_v43  ;;  %v2766_v61 = vpack.c.bf16 %v1755_v53, %v1754_v52  ;;  %v2736_v0 = vpack.c.bf16 %v1741_v55, %v1740_v54  ;;  %v1781_v44 = vld [vmem:[#allocation10 + $0x1f8] sm:$0xff]  ;;  %v1764_v54 = vld [vmem:[#allocation10 + $0x170] sm:$0xff] }
 0x263   :  { %v1765_v55 = vld [vmem:[#allocation10 + $0x178] sm:$0xff] }
 0x264   :  { %v2786_v56 = vpack.c.bf16 %v1765_v55, %v1764_v54 }
 0x265   :  { %2591 = vmatpush1.bf16.msra.mxu0 %v2590_v4  ;;  %2719 = vmatpush1.bf16.msra.mxu1 %v2718_v5  ;;  %v1742_v4 = vld [vmem:[#allocation10 + $0xc0] sm:$0xff]  ;;  %v1743_v5 = vld [vmem:[#allocation10 + $0xc8] sm:$0xff] }
 0x266   :  { %2593 = vmatprep.subr.bf16.mxu0 %v2592_v9  ;;  %2721 = vmatprep.subr.bf16.mxu1 %v2720_v10  ;;  %v2770_v9 = vpack.c.bf16 %v1757_v3, %v1756_v2  ;;  %v1726_v10 = vld [vmem:[#allocation10 + $0x40] sm:$0xff]  ;;  %v2740_v12 = vpack.c.bf16 %v1743_v5, %v1742_v4 }
 0x267   :  { %v2742_v20 = vpack.c.bf16 %v1727_v11, %v1726_v10 }
 0x269   :  { %2595 = vmatpush1.bf16.msra.mxu0 %v2594_v17  ;;  %2723 = vmatpush1.bf16.msra.mxu1 %v2722_v18  ;;  %v1745_v17 = vld [vmem:[#allocation10 + $0xd8] sm:$0xff]  ;;  %v1776_v18 = vld [vmem:[#allocation10 + $0x1d0] sm:$0xff] }
 0x26a   :  { %2725 = vmatprep.subr.bf16.mxu0 %v2724_v49  ;;  %2757 = vmatprep.subr.bf16.mxu1 %v2756_v22  ;;  %v1728_v49 = vld [vmem:[#allocation10 + $0x50] sm:$0xff]  ;;  %v1729_v22 = vld [vmem:[#allocation10 + $0x58] sm:$0xff]  ;;  %v2744_v23 = vpack.c.bf16 %v1745_v17, %v1744_v16  ;;  %v2776_v24 = vpack.c.bf16 %v1777_v19, %v1776_v18 }
 0x26b   :  { %v2746_v31 = vpack.c.bf16 %v1729_v22, %v1728_v49 }
 0x26c   :  { %1566 = vmatmul.mubr.f32.vlgmr.msra.gmra.mrb[2].mxu0 %v1150_v33  ;;  %1708 = vmatmul.mubr.f32.vlgmr.msra.gmra.mrb[2].mxu1 %v1150_v33  ;;  %v2748_v33 = vpack.c.bf16 %v1747_v28, %v1746_v27 }
 0x26d   :  { %2727 = vmatpush3.bf16.msra.mxu0 %v2726_v29  ;;  %2759 = vmatpush3.bf16.msra.mxu1 %v2758_v30  ;;  %v1778_v29 = vld [vmem:[#allocation10 + $0x1e0] sm:$0xff]  ;;  %v1779_v30 = vld [vmem:[#allocation10 + $0x1e8] sm:$0xff] }
 0x26e   :  { %2729 = vmatprep.subr.bf16.mxu0 %v2728_v58  ;;  %2761 = vmatprep.subr.bf16.mxu1 %v2760_v34  ;;  %v2780_v58 = vpack.c.bf16 %v1779_v30, %v1778_v29  ;;  %v1730_v34 = vld [vmem:[#allocation10 + $0x60] sm:$0xff] }
 0x26f   :  { %v2750_v37 = vpack.c.bf16 %v1731_v35, %v1730_v34 }
 0x271   :  { %2731 = vmatpush3.bf16.msra.mxu0 %v2730_v41  ;;  %2763 = vmatpush3.bf16.msra.mxu1 %v2762_v42  ;;  %v1749_v41 = vld [vmem:[#allocation10 + $0xf8] sm:$0xff]  ;;  %v1780_v42 = vld [vmem:[#allocation10 + $0x1f0] sm:$0xff] }
 0x272   :  { %2733 = vmatprep.subr.bf16.mxu0 %v2732_v45  ;;  %2765 = vmatprep.subr.bf16.mxu1 %v2764_v46  ;;  %v2752_v43 = vpack.c.bf16 %v1749_v41, %v1748_v40  ;;  %v1732_v45 = vld [vmem:[#allocation10 + $0x70] sm:$0xff]  ;;  %v1733_v46 = vld [vmem:[#allocation10 + $0x78] sm:$0xff]  ;;  %v2784_v52 = vpack.c.bf16 %v1781_v44, %v1780_v42 }
 0x273   :  { %v2754_v53 = vpack.c.bf16 %v1733_v46, %v1732_v45 }
 0x275   :  { %2735 = vmatpush3.bf16.msra.mxu0 %v2734_v60  ;;  %2767 = vmatpush3.bf16.msra.mxu1 %v2766_v61  ;;  %v1413_v60 = vrot.slane %v1408_v57, %v562_v48  ;;  %v1421_v61 = vrot.slane %v1408_v57, %v570_v59 }
 0x276   :  { %2737 = vmatprep.subr.bf16.mxu0 %v2736_v0  ;;  %2769 = vmatprep.subr.bf16.mxu1 %v2768_v1 }
 0x279   :  { %2739 = vmatpush3.bf16.msra.mxu0 %v2738_v8  ;;  %2771 = vmatpush3.bf16.msra.mxu1 %v2770_v9 }
 0x27a   :  { %2741 = vmatprep.subr.bf16.mxu0 %v2740_v12  ;;  %2773 = vmatprep.subr.bf16.mxu1 %v2772_v13 }
 0x27d   :  { %2743 = vmatpush3.bf16.msra.mxu0 %v2742_v20  ;;  %2775 = vmatpush3.bf16.msra.mxu1 %v2774_v21 }
 0x27e   :  { %2745 = vmatprep.subr.bf16.mxu0 %v2744_v23  ;;  %2777 = vmatprep.subr.bf16.mxu1 %v2776_v24 }
 0x281   :  { %2747 = vmatpush3.bf16.msra.mxu0 %v2746_v31  ;;  %2779 = vmatpush3.bf16.msra.mxu1 %v2778_v32 }
 0x282   :  { %2749 = vmatprep.subr.bf16.mxu0 %v2748_v33  ;;  %2781 = vmatprep.subr.bf16.mxu1 %v2780_v58 }
 0x285   :  { %2751 = vmatpush3.bf16.msra.mxu0 %v2750_v37  ;;  %2783 = vmatpush3.bf16.msra.mxu1 %v2782_v39 }
 0x286   :  { %2753 = vmatprep.subr.bf16.mxu0 %v2752_v43  ;;  %2785 = vmatprep.subr.bf16.mxu1 %v2784_v52 }
 0x289   :  { %2755 = vmatpush3.bf16.msra.mxu0 %v2754_v53  ;;  %2787 = vmatpush3.bf16.msra.mxu1 %v2786_v56 }
 0x33f   :  { %v1567_v0 = vpop.f32.mrb[2].mxu0  ;;  %v1709_v1 = vpop.f32.mrb[2].mxu1 }
 0x340   :  { %v2792_v2 = vadd.f32 %v1567_v0, %v1413_v60  ;;  %v2794_v3 = vadd.f32 %v1709_v1, %v1421_v61  ;;  %v1569_v4 = vpop.f32.mrb[3].mxu0  ;;  %v1711_v5 = vpop.f32.mrb[3].mxu1 }
 0x341   :  { %v2793_v6 = vadd.f32 %v1569_v4, %v1417_v62  ;;  %v2795_v7 = vadd.f32 %v1711_v5, %v1425_v63 }
 0x342   :  { %v1714_v48 = vmax.f32 %v2792_v2, 0.0  ;;  %v1716_v10 = vmax.f32 %v2794_v3, 0.0 }
 0x343   :  { %v1715_v8 = vmax.f32 %v2793_v6, 0.0  ;;  %v1717_v9 = vmax.f32 %v2795_v7, 0.0 }
 0x345   :  { %1853 = vmatprep.mubr.f32.mxu0 %v1715_v8  ;;  %1923 = vmatprep.mubr.f32.mxu1 %v1717_v9 }
 0x346   :  { %1854 = vmatmul.mubr.f32.vlgmr.msra.gmra.mrb[4].mxu0 %v1714_v48  ;;  %1924 = vmatmul.mubr.f32.vlgmr.msra.gmra.mrb[4].mxu1 %v1716_v10 }
 0x419   :  { %v1982_v50 = vpop.f32.mrb[4].mxu0  ;;  %v2017_v59 = vpop.f32.mrb[4].mxu1 }
 0x41a   :  { %v1983_v51 = vpop.f32.mrb[5].mxu0  ;;  %v2018_v11 = vpop.f32.mrb[5].mxu1 }
 0x41b   :  { %v1984_v12 = vadd.f32 %v1983_v51, %v1982_v50  ;;  %v2019_v13 = vadd.f32 %v2018_v11, %v2017_v59 }
 0x41d   :  { %v1856_v14 = vadd.f32 %v1984_v12, %v1949_v47 }
 0x41f   :  { %v1926_v15 = vadd.f32 %v2019_v13, %v1856_v14 }
 0x421   :  { %v1929_v16 = vmax.f32 %v1926_v15, 0.0 }
 0x423   :  { %1930 = vst [vmem:[#allocation13] sm:$0xff] %v1929_v16 }
 0x424   :  { %2967 = shalt.err (!%p2964_p10)
}
 0x425   :  { %s2968_s15 = scalar_lea.hbm %s3183_s7, 128 }
 0x426   :  { %p2969_p11 = scmp.ne.s32.totalorder %s3183_s7, %s2968_s15  ;;  %p2972_p12 = scmp.lt.u32.totalorder %s2968_s15, %s3183_s7 }
 0x428   :  { %p2974_p13 = pnand %p2972_p12, %p2969_p11 }
 0x42a   :  { %2977 = shalt.err (!%p2974_p13)
}
 0x42b   :  { %1940 = dma.vmem_to_hbm [thread:$0]  %s1938_s27, 128, %s3183_s7, [#allocation4]  }
 0x42c   :  { %2986 = dma.done.wait [#allocation4], 128  }
 0x42d   :  { %2987 = vsyncadd [#allocation4], 4294967168 }
 0x42e   :  { %1944 = vsyncpa [#allocation3], 1 }
 0x42f   :  { %1945 = vsyncpa [#allocation6], 1 }
 0x430   :  { %1946 = vsyncpa [#allocation9], 1 }
 0x431   :  { %1947 = vsyncpa [#allocation12], 1 }
 0x432   :  { %1948 = vsyncpa [#allocation4], 1 }

</bundles_post_ra>
